<compile_context>
chip_gen: v5e
topology: v5e:2x2
jax: 0.10.0
libtpu: 0.0.40
codegen_flags: <defaults>
</compile_context>

<pallas_src>
import functools
import math

import jax
import jax.numpy as jnp
from jax.experimental import pallas as pl
from jax.experimental.pallas import tpu as pltpu


# --------------------------------------------------------------------------- #
# Kernel
# --------------------------------------------------------------------------- #
def transformer_kernel(
    pe_ref, x_ref, mask_ref,
    wqkv_ref, wo_ref, w1_ref, w2_ref, vec_ref,
    wout_ref, bout_ref,
    out_ref,
    x_scr,
    *, n_head,
):
    l = pl.program_id(1)
    n_l = pl.num_programs(1)

    Bt, S, D = x_ref.shape
    H = n_head
    dh = D // H
    F = w1_ref.shape[-1]
    M = Bt * S
    G = H * Bt                       # merged (head, batch) attention batch axis
    scale = 1.0 / math.sqrt(dh)
    eps = 1e-5

    # ---- layer 0: build the residual stream (x + positional encoding) once
    #      per batch block and keep it resident in VMEM across all layers ----
    @pl.when(l == 0)
    def _init():
        x0 = x_ref[...].astype(jnp.float32) + pe_ref[...].astype(jnp.float32)[None]
        x_scr[...] = x0.reshape(M, D)

    # ---- packed per-layer vectors: one DMA instead of 8 tiny ones ----------
    vec = vec_ref[0]                             # (8, Vmax) f32
    bqkv = vec[0:1, :3 * D]
    bo, b1, b2 = vec[1:2, :D], vec[2:3, :F], vec[3:4, :D]
    ln1_g, ln1_b = vec[4:5, :D], vec[5:6, :D]
    ln2_g, ln2_b = vec[6:7, :D], vec[7:8, :D]

    def layer_norm(h, g, b):
        mu = jnp.mean(h, axis=-1, keepdims=True)
        var = jnp.mean((h - mu) ** 2, axis=-1, keepdims=True)
        return (h - mu) * jax.lax.rsqrt(var + eps) * g + b

    x = x_scr[...]                               # (M, D) f32 residual stream

    # ---- fused Q/K/V projection: single bf16 MXU matmul, f32 accumulation --
    qkv = jnp.dot(x.astype(jnp.bfloat16), wqkv_ref[0],
                  preferred_element_type=jnp.float32) + bqkv       # (M, 3D)

    # ---- lane -> head-major rearrangement, done ONCE per layer per tensor:
    #      (M, D) slice of qkv -> (H, M, dh) -> (H*Bt, S, dh), g = h*Bt + b ---
    def to_heads(off):
        cols = [qkv[:, off + h * dh: off + (h + 1) * dh] for h in range(H)]
        t = jnp.stack(cols, axis=0)              # (H, M, dh)
        return t.reshape(G, S, dh).astype(jnp.bfloat16)

    qh, kh, vh = to_heads(0), to_heads(D), to_heads(2 * D)

    # additive attention mask, computed inline (no O(S^2) scratch), replicated
    # per head along the merged batch axis (g = h*Bt + b ordering)
    bias = jnp.where(mask_ref[...] == 0, -10000.0, 0.0).astype(jnp.float32)  # (Bt,S,S)
    bias = jnp.broadcast_to(bias[None], (H, Bt, S, S)).reshape(G, S, S)

    # ---- attention: ONE batched 3-D einsum over all Bt*H heads for scores
    #      and one for P @ V ------------------------------------------------
    s = jnp.einsum("gqd,gkd->gqk", qh, kh,
                   preferred_element_type=jnp.float32) * scale + bias
    s = s - jnp.max(s, axis=-1, keepdims=True)
    p = jnp.exp(s)
    p = p * pl.reciprocal(jnp.sum(p, axis=-1, keepdims=True), approx=True)
    o = jnp.einsum("gqk,gkd->gqd", p.astype(jnp.bfloat16), vh,
                   preferred_element_type=jnp.float32)             # (G, S, dh)

    # merge heads back: (G, S, dh) -> (H, M, dh) -> one lane concatenate
    o = o.reshape(H, M, dh)
    attn = jnp.concatenate([o[h] for h in range(H)], axis=-1)      # (M, D)

    attn = jnp.dot(attn.astype(jnp.bfloat16), wo_ref[0],
                   preferred_element_type=jnp.float32) + bo

    # residual + layer norm 1   (dropout == identity)
    x = layer_norm(attn + x, ln1_g, ln1_b)

    # ---- position-wise feed-forward ----------------------------------------
    hdn = jnp.dot(x.astype(jnp.bfloat16), w1_ref[0],
                  preferred_element_type=jnp.float32) + b1
    hdn = jnp.maximum(hdn, 0.0)
    ffn = jnp.dot(hdn.astype(jnp.bfloat16), w2_ref[0],
                  preferred_element_type=jnp.float32) + b2

    # residual + layer norm 2   (dropout == identity)
    x = layer_norm(ffn + x, ln2_g, ln2_b)
    x_scr[...] = x

    # ---- final projection, only after the last layer ------------------------
    @pl.when(l == n_l - 1)
    def _final():
        out = jnp.dot(x.astype(jnp.bfloat16), wout_ref[...],
                      preferred_element_type=jnp.float32) + bout_ref[...]
        out_ref[...] = out.reshape(Bt, S, D).astype(out_ref.dtype)


# --------------------------------------------------------------------------- #
# Wrapper helpers
# --------------------------------------------------------------------------- #
def _num_tensorcores():
    """Best-effort TensorCore count of device 0 (1 on v5e/v6e, 2 on v7x)."""
    try:
        dev = jax.devices()[0]
        for attr in ("num_cores", "core_count", "num_tensorcores"):
            v = getattr(dev, attr, None)
            if isinstance(v, int) and v > 0:
                return v
    except Exception:
        pass
    return 1


def _pick_batch_block(batch, n_cores):
    # Single-TC chips: keep the whole batch in one block so each layer's
    # weights are streamed from HBM exactly once.  Only split when multiple
    # TensorCores can actually consume the "parallel" grid axis.
    if batch <= 1 or n_cores <= 1:
        return batch
    per_core = -(-batch // n_cores)
    for bt in range(per_core, 0, -1):
        if batch % bt == 0:
            return bt
    return batch


def _vmem_limit_bytes():
    cap = 128 * 1024 * 1024
    try:
        info = pltpu.get_tpu_info()
        cap = int(getattr(info, "vmem_capacity_bytes", cap))
    except Exception:
        pass
    # leave headroom for compiler scratch; cap at ~100 MiB on 128 MiB parts.
    return int(min(max(cap - 16 * 1024 * 1024, 32 * 1024 * 1024),
                   100 * 1024 * 1024))


def pack_params(params):
    """One-time preprocessing: fused QKV weight, bf16 matmul weights, and all
    small per-layer vectors packed into a single (L, 8, Vmax) array."""
    L, D, _ = params["wq"].shape
    F = params["w1"].shape[-1]
    vmax = max(3 * D, F)

    def vec_row(v):
        v = v.reshape(L, -1).astype(jnp.float32)
        return jnp.pad(v, ((0, 0), (0, vmax - v.shape[-1])))

    vec = jnp.stack([
        vec_row(jnp.concatenate([params["bq"], params["bk"], params["bv"]], axis=-1)),
        vec_row(params["bo"]),
        vec_row(params["b1"]),
        vec_row(params["b2"]),
        vec_row(params["ln1_g"]), vec_row(params["ln1_b"]),
        vec_row(params["ln2_g"]), vec_row(params["ln2_b"]),
    ], axis=1)                                               # (L, 8, Vmax) f32

    return {
        "pe": params["pe"].astype(jnp.float32),              # (max_len, D)
        "wqkv": jnp.concatenate([params["wq"], params["wk"], params["wv"]],
                                axis=-1).astype(jnp.bfloat16),   # (L, D, 3D)
        "wo": params["wo"].astype(jnp.bfloat16),              # (L, D, D)
        "w1": params["w1"].astype(jnp.bfloat16),              # (L, D, F)
        "w2": params["w2"].astype(jnp.bfloat16),              # (L, F, D)
        "vec": vec,
        "wout": params["wout"].astype(jnp.bfloat16),          # (D, D)
        "bout": params["bout"].reshape(1, -1).astype(jnp.float32),
    }


def transformer_forward(trg, mask, packed, *, n_layers, n_head):
    B, S, D = trg.shape
    L = n_layers
    H = n_head
    assert D % H == 0
    dh = D // H
    F = packed["w1"].shape[-1]

    Bt = _pick_batch_block(B, _num_tensorcores())
    b_blocks = B // Bt

    pe = packed["pe"]
    wqkv, wo, w1, w2 = packed["wqkv"], packed["wo"], packed["w1"], packed["w2"]
    vec, wout, bout = packed["vec"], packed["wout"], packed["bout"]
    mask = mask.astype(jnp.int32)

    def const_spec(arr, block=None):
        shape = block if block is not None else arr.shape
        nd = len(shape)
        return pl.BlockSpec(shape, lambda b, l, _nd=nd: (0,) * _nd)

    def layer_spec(arr):
        nd = arr.ndim
        return pl.BlockSpec((1,) + arr.shape[1:],
                            lambda b, l, _nd=nd: (l,) + (0,) * (_nd - 1))

    in_specs = [
        const_spec(pe, (S, D)),                               # first S rows of PE
        pl.BlockSpec((Bt, S, D), lambda b, l: (b, 0, 0)),
        pl.BlockSpec((Bt, S, S), lambda b, l: (b, 0, 0)),
        layer_spec(wqkv), layer_spec(wo), layer_spec(w1), layer_spec(w2),
        layer_spec(vec),
        const_spec(wout), const_spec(bout),
    ]

    flops_layer = (2 * B * S * D * (3 * D)      # fused QKV
                   + 4 * B * H * S * S * dh     # scores + P@V
                   + 2 * B * S * D * D          # output proj
                   + 4 * B * S * D * F)         # FFN
    cost = pl.CostEstimate(
        flops=int(L * flops_layer + 2 * B * S * D * D),
        transcendentals=int(L * B * H * S * S),
        bytes_accessed=int(
            trg.size * 4 + mask.size * 4 + B * S * D * 4
            + b_blocks * 2 * (wqkv.size + wo.size + w1.size + w2.size)
            + b_blocks * 4 * vec.size + 2 * wout.size + 4 * bout.size),
    )

    kernel = functools.partial(transformer_kernel, n_head=n_head)

    return pl.pallas_call(
        kernel,
        out_shape=jax.ShapeDtypeStruct((B, S, D), jnp.float32),
        grid_spec=pltpu.PrefetchScalarGridSpec(
            num_scalar_prefetch=0,
            grid=(b_blocks, L),                 # batch blocks x layers (layers inner)
            in_specs=in_specs,
            out_specs=pl.BlockSpec((Bt, S, D), lambda b, l: (b, 0, 0)),
            scratch_shapes=[
                pltpu.VMEM((Bt * S, D), jnp.float32),   # residual-stream carry
            ],
        ),
        compiler_params=pltpu.CompilerParams(
            dimension_semantics=("parallel", "arbitrary"),
            vmem_limit_bytes=_vmem_limit_bytes(),
        ),
        cost_estimate=cost,
    )(pe, trg, mask, wqkv, wo, w1, w2, vec, wout, bout)


# --------------------------------------------------------------------------- #
# Parameter init + pure-JAX reference (for validation)
# --------------------------------------------------------------------------- #
def init_params(key, max_len, d_model, ffn_hidden, n_layers):
    # sinusoidal positional encoding (as in the reference PositionalEncoding)
    pos = jnp.arange(max_len, dtype=jnp.float32)[:, None]
    i2 = jnp.arange(0, d_model, 2, dtype=jnp.float32)
    div = jnp.power(10000.0, i2 / d_model)
    pe = jnp.zeros((max_len, d_model), jnp.float32)
    pe = pe.at[:, 0::2].set(jnp.sin(pos / div))
    pe = pe.at[:, 1::2].set(jnp.cos(pos / div))

    ks = jax.random.split(key, 16)

    def nrm(k, shape, s=0.02):
        return s * jax.random.normal(k, shape, jnp.float32)

    L, D, F = n_layers, d_model, ffn_hidden
    return {
        "pe": pe,
        "wq": nrm(ks[0], (L, D, D)), "bq": nrm(ks[1], (L, D)),
        "wk": nrm(ks[2], (L, D, D)), "bk": nrm(ks[3], (L, D)),
        "wv": nrm(ks[4], (L, D, D)), "bv": nrm(ks[5], (L, D)),
        "wo": nrm(ks[6], (L, D, D)), "bo": nrm(ks[7], (L, D)),
        "ln1_g": jnp.ones((L, D), jnp.float32), "ln1_b": jnp.zeros((L, D), jnp.float32),
        "w1": nrm(ks[8], (L, D, F)), "b1": nrm(ks[9], (L, F)),
        "w2": nrm(ks[10], (L, F, D)), "b2": nrm(ks[11], (L, D)),
        "ln2_g": jnp.ones((L, D), jnp.float32), "ln2_b": jnp.zeros((L, D), jnp.float32),
        "wout": nrm(ks[12], (D, D)), "bout": nrm(ks[13], (1, D)),
    }


def transformer_reference(trg, mask, params, *, n_layers, n_head):
    """Pure-JAX f32 reference of the same forward pass."""
    B, S, D = trg.shape
    dh = D // n_head
    eps = 1e-5
    x = trg + params["pe"][:S, :][None]

    def ln(h, g, b):
        mu = jnp.mean(h, -1, keepdims=True)
        var = jnp.mean((h - mu) ** 2, -1, keepdims=True)
        return (h - mu) * jax.lax.rsqrt(var + eps) * g + b

    for l in range(n_layers):
        q = x @ params["wq"][l] + params["bq"][l]
        k = x @ params["wk"][l] + params["bk"][l]
        v = x @ params["wv"][l] + params["bv"][l]
        q = q.reshape(B, S, n_head, dh).transpose(0, 2, 1, 3)
        k = k.reshape(B, S, n_head, dh).transpose(0, 2, 1, 3)
        v = v.reshape(B, S, n_head, dh).transpose(0, 2, 1, 3)
        s = jnp.einsum("bhqd,bhkd->bhqk", q, k) / math.sqrt(dh)
        s = jnp.where(mask[:, None, :, :] == 0, -10000.0, s)
        p = jax.nn.softmax(s, axis=-1)
        a = jnp.einsum("bhqk,bhkd->bhqd", p, v).transpose(0, 2, 1, 3).reshape(B, S, D)
        a = a @ params["wo"][l] + params["bo"][l]
        x = ln(a + x, params["ln1_g"][l], params["ln1_b"][l])
        f = jnp.maximum(x @ params["w1"][l] + params["b1"][l], 0.0) @ params["w2"][l] + params["b2"][l]
        x = ln(f + x, params["ln2_g"][l], params["ln2_b"][l])
    return x @ params["wout"] + params["bout"][0]


# --------------------------------------------------------------------------- #
# Main
# --------------------------------------------------------------------------- #
if __name__ == "__main__":
    B, S = 2, 8
    max_len, d_model, ffn_hidden, n_head, n_layers = 16, 32, 64, 4, 2

    key = jax.random.PRNGKey(0)
    k_trg, k_par = jax.random.split(key)

    trg = jax.random.normal(k_trg, (B, S, d_model), jnp.float32)
    # causal target mask, shape (B, S, S), 1 = attend, 0 = masked
    mask = jnp.tril(jnp.ones((S, S), jnp.int32))[None].repeat(B, axis=0)

    params = init_params(k_par, max_len, d_model, ffn_hidden, n_layers)
    packed = pack_params(params)            # one-time weight packing (not per call)

    out = transformer_forward(trg, mask, packed, n_layers=n_layers, n_head=n_head)
    out = jax.block_until_ready(out)

    ref = transformer_reference(trg, mask, params, n_layers=n_layers, n_head=n_head)
    assert out.shape == (B, S, d_model)
    # kernel uses bf16 MXU inputs (f32 accumulation) + approx reciprocal, so the
    # tolerance vs. the pure-f32 reference is slightly loosened.
    assert jnp.allclose(out, ref, rtol=2e-2, atol=2e-2), "mismatch vs. reference"

    print("KERNEL_OK")
</pallas_src>

<mosaic_0001>
module attributes {stable_mosaic.version = 11 : i64} {
  func.func @transformer_kernel(%arg0: i32, %arg1: i32, %arg2: memref<8x32xf32, #tpu.memory_space<vmem>>, %arg3: memref<2x8x32xf32, #tpu.memory_space<vmem>>, %arg4: memref<2x8x8xi32, #tpu.memory_space<vmem>>, %arg5: memref<1x32x96xbf16, #tpu.memory_space<vmem>>, %arg6: memref<1x32x32xbf16, #tpu.memory_space<vmem>>, %arg7: memref<1x32x64xbf16, #tpu.memory_space<vmem>>, %arg8: memref<1x64x32xbf16, #tpu.memory_space<vmem>>, %arg9: memref<1x8x96xf32, #tpu.memory_space<vmem>>, %arg10: memref<32x32xbf16, #tpu.memory_space<vmem>>, %arg11: memref<1x32xf32, #tpu.memory_space<vmem>>, %arg12: memref<2x8x32xf32, #tpu.memory_space<vmem>>, %arg13: memref<16x32xf32, #tpu.memory_space<vmem>>) attributes {dimension_semantics = [#tpu.dimension_semantics<parallel>, #tpu.dimension_semantics<arbitrary>], iteration_bounds = array<i64: 1, 2>, scalar_prefetch = 0 : i64, scratch_operands = 1 : i64, tpu.core_type = #tpu.core_type<tc>, window_params = [{transform_indices = @transform_0, window_bounds = array<i64: 8, 32>}, {transform_indices = @transform_1, window_bounds = array<i64: 2, 8, 32>}, {transform_indices = @transform_2, window_bounds = array<i64: 2, 8, 8>}, {transform_indices = @transform_3, window_bounds = array<i64: 1, 32, 96>}, {transform_indices = @transform_4, window_bounds = array<i64: 1, 32, 32>}, {transform_indices = @transform_5, window_bounds = array<i64: 1, 32, 64>}, {transform_indices = @transform_6, window_bounds = array<i64: 1, 64, 32>}, {transform_indices = @transform_7, window_bounds = array<i64: 1, 8, 96>}, {pipeline_mode = #tpu.pipeline_mode<synchronous>, transform_indices = @transform_8, window_bounds = array<i64: 32, 32>}, {pipeline_mode = #tpu.pipeline_mode<synchronous>, transform_indices = @transform_9, window_bounds = array<i64: 1, 32>}, {transform_indices = @transform_10, window_bounds = array<i64: 2, 8, 32>}]} {
    %c0_i32 = arith.constant 0 : i32
    %0 = arith.cmpi eq, %arg1, %c0_i32 : i32
    %1 = arith.extui %0 : i1 to i32
    %c0_i32_0 = arith.constant 0 : i32
    %2 = arith.cmpi ne, %1, %c0_i32_0 : i32
    scf.if %2 {
      %c0_45 = arith.constant 0 : index
      %c0_46 = arith.constant 0 : index
      %c0_47 = arith.constant 0 : index
      %159 = vector.load %arg3[%c0_45, %c0_46, %c0_47] : memref<2x8x32xf32, #tpu.memory_space<vmem>>, vector<2x8x32xf32>
      %c0_48 = arith.constant 0 : index
      %c0_49 = arith.constant 0 : index
      %160 = vector.load %arg2[%c0_48, %c0_49] : memref<8x32xf32, #tpu.memory_space<vmem>>, vector<8x32xf32>
      %161 = vector.shape_cast %160 : vector<8x32xf32> to vector<1x8x32xf32>
      %162 = vector.broadcast %161 : vector<1x8x32xf32> to vector<2x8x32xf32>
      %163 = arith.addf %159, %162 : vector<2x8x32xf32>
      %164 = vector.shape_cast %163 : vector<2x8x32xf32> to vector<16x32xf32>
      %c0_50 = arith.constant 0 : index
      %c0_51 = arith.constant 0 : index
      %165 = vector.load %arg13[%c0_50, %c0_51] : memref<16x32xf32, #tpu.memory_space<vmem>>, vector<16x32xf32>
      tpu.vector_store %arg13[%c0_50, %c0_51], %164 {strides = array<i32>} : memref<16x32xf32, #tpu.memory_space<vmem>>, vector<16x32xf32>,
    } else {
    }
    %c0 = arith.constant 0 : index
    %c0_1 = arith.constant 0 : index
    %c0_2 = arith.constant 0 : index
    %3 = vector.load %arg9[%c0, %c0_1, %c0_2] : memref<1x8x96xf32, #tpu.memory_space<vmem>>, vector<1x8x96xf32>
    %4 = vector.shape_cast %3 : vector<1x8x96xf32> to vector<8x96xf32>
    %5 = vector.extract_strided_slice %4 {offsets = [0, 0], sizes = [1, 96], strides = [1, 1]} : vector<8x96xf32> to vector<1x96xf32>
    %6 = vector.extract_strided_slice %4 {offsets = [1, 0], sizes = [1, 32], strides = [1, 1]} : vector<8x96xf32> to vector<1x32xf32>
    %7 = vector.extract_strided_slice %4 {offsets = [2, 0], sizes = [1, 64], strides = [1, 1]} : vector<8x96xf32> to vector<1x64xf32>
    %8 = vector.extract_strided_slice %4 {offsets = [3, 0], sizes = [1, 32], strides = [1, 1]} : vector<8x96xf32> to vector<1x32xf32>
    %9 = vector.extract_strided_slice %4 {offsets = [4, 0], sizes = [1, 32], strides = [1, 1]} : vector<8x96xf32> to vector<1x32xf32>
    %10 = vector.extract_strided_slice %4 {offsets = [5, 0], sizes = [1, 32], strides = [1, 1]} : vector<8x96xf32> to vector<1x32xf32>
    %11 = vector.extract_strided_slice %4 {offsets = [6, 0], sizes = [1, 32], strides = [1, 1]} : vector<8x96xf32> to vector<1x32xf32>
    %12 = vector.extract_strided_slice %4 {offsets = [7, 0], sizes = [1, 32], strides = [1, 1]} : vector<8x96xf32> to vector<1x32xf32>
    %c0_3 = arith.constant 0 : index
    %c0_4 = arith.constant 0 : index
    %13 = vector.load %arg13[%c0_3, %c0_4] : memref<16x32xf32, #tpu.memory_space<vmem>>, vector<16x32xf32>
    %14 = arith.truncf %13 : vector<16x32xf32> to vector<16x32xbf16>
    %c0_5 = arith.constant 0 : index
    %c0_6 = arith.constant 0 : index
    %c0_7 = arith.constant 0 : index
    %15 = vector.load %arg5[%c0_5, %c0_6, %c0_7] : memref<1x32x96xbf16, #tpu.memory_space<vmem>>, vector<1x32x96xbf16>
    %16 = vector.shape_cast %15 : vector<1x32x96xbf16> to vector<32x96xbf16>
    %cst = arith.constant dense<0.000000e+00> : vector<16x96xf32>
    %17 = tpu.matmul %14, %16, %cst {dimension_numbers = #tpu.dot_dimension_numbers<[1], [0], [0], [1], [0, 0, 1, 1], [], []>} : vector<16x32xbf16>, vector<32x96xbf16>, vector<16x96xf32> -> vector<16x96xf32>
    %18 = vector.broadcast %5 : vector<1x96xf32> to vector<16x96xf32>
    %19 = arith.addf %17, %18 : vector<16x96xf32>
    %20 = vector.extract_strided_slice %19 {offsets = [0, 0], sizes = [16, 8], strides = [1, 1]} : vector<16x96xf32> to vector<16x8xf32>
    %21 = vector.extract_strided_slice %19 {offsets = [0, 8], sizes = [16, 8], strides = [1, 1]} : vector<16x96xf32> to vector<16x8xf32>
    %22 = vector.extract_strided_slice %19 {offsets = [0, 16], sizes = [16, 8], strides = [1, 1]} : vector<16x96xf32> to vector<16x8xf32>
    %23 = vector.extract_strided_slice %19 {offsets = [0, 24], sizes = [16, 8], strides = [1, 1]} : vector<16x96xf32> to vector<16x8xf32>
    %24 = vector.shape_cast %20 : vector<16x8xf32> to vector<1x16x8xf32>
    %25 = vector.shape_cast %21 : vector<16x8xf32> to vector<1x16x8xf32>
    %26 = vector.shape_cast %22 : vector<16x8xf32> to vector<1x16x8xf32>
    %27 = vector.shape_cast %23 : vector<16x8xf32> to vector<1x16x8xf32>
    %28 = tpu.concatenate %24, %25, %26, %27 in 0 : vector<1x16x8xf32>, vector<1x16x8xf32>, vector<1x16x8xf32>, vector<1x16x8xf32> -> vector<4x16x8xf32>
    %29 = vector.shape_cast %28 : vector<4x16x8xf32> to vector<8x8x8xf32>
    %30 = arith.truncf %29 : vector<8x8x8xf32> to vector<8x8x8xbf16>
    %31 = vector.extract_strided_slice %19 {offsets = [0, 32], sizes = [16, 8], strides = [1, 1]} : vector<16x96xf32> to vector<16x8xf32>
    %32 = vector.extract_strided_slice %19 {offsets = [0, 40], sizes = [16, 8], strides = [1, 1]} : vector<16x96xf32> to vector<16x8xf32>
    %33 = vector.extract_strided_slice %19 {offsets = [0, 48], sizes = [16, 8], strides = [1, 1]} : vector<16x96xf32> to vector<16x8xf32>
    %34 = vector.extract_strided_slice %19 {offsets = [0, 56], sizes = [16, 8], strides = [1, 1]} : vector<16x96xf32> to vector<16x8xf32>
    %35 = vector.shape_cast %31 : vector<16x8xf32> to vector<1x16x8xf32>
    %36 = vector.shape_cast %32 : vector<16x8xf32> to vector<1x16x8xf32>
    %37 = vector.shape_cast %33 : vector<16x8xf32> to vector<1x16x8xf32>
    %38 = vector.shape_cast %34 : vector<16x8xf32> to vector<1x16x8xf32>
    %39 = tpu.concatenate %35, %36, %37, %38 in 0 : vector<1x16x8xf32>, vector<1x16x8xf32>, vector<1x16x8xf32>, vector<1x16x8xf32> -> vector<4x16x8xf32>
    %40 = vector.shape_cast %39 : vector<4x16x8xf32> to vector<8x8x8xf32>
    %41 = arith.truncf %40 : vector<8x8x8xf32> to vector<8x8x8xbf16>
    %42 = vector.extract_strided_slice %19 {offsets = [0, 64], sizes = [16, 8], strides = [1, 1]} : vector<16x96xf32> to vector<16x8xf32>
    %43 = vector.extract_strided_slice %19 {offsets = [0, 72], sizes = [16, 8], strides = [1, 1]} : vector<16x96xf32> to vector<16x8xf32>
    %44 = vector.extract_strided_slice %19 {offsets = [0, 80], sizes = [16, 8], strides = [1, 1]} : vector<16x96xf32> to vector<16x8xf32>
    %45 = vector.extract_strided_slice %19 {offsets = [0, 88], sizes = [16, 8], strides = [1, 1]} : vector<16x96xf32> to vector<16x8xf32>
    %46 = vector.shape_cast %42 : vector<16x8xf32> to vector<1x16x8xf32>
    %47 = vector.shape_cast %43 : vector<16x8xf32> to vector<1x16x8xf32>
    %48 = vector.shape_cast %44 : vector<16x8xf32> to vector<1x16x8xf32>
    %49 = vector.shape_cast %45 : vector<16x8xf32> to vector<1x16x8xf32>
    %50 = tpu.concatenate %46, %47, %48, %49 in 0 : vector<1x16x8xf32>, vector<1x16x8xf32>, vector<1x16x8xf32>, vector<1x16x8xf32> -> vector<4x16x8xf32>
    %51 = vector.shape_cast %50 : vector<4x16x8xf32> to vector<8x8x8xf32>
    %52 = arith.truncf %51 : vector<8x8x8xf32> to vector<8x8x8xbf16>
    %c0_8 = arith.constant 0 : index
    %c0_9 = arith.constant 0 : index
    %c0_10 = arith.constant 0 : index
    %53 = vector.load %arg4[%c0_8, %c0_9, %c0_10] : memref<2x8x8xi32, #tpu.memory_space<vmem>>, vector<2x8x8xi32>
    %c0_i32_11 = arith.constant 0 : i32
    %54 = vector.broadcast %c0_i32_11 : i32 to vector<2x8x8xi32>
    %55 = arith.cmpi eq, %53, %54 : vector<2x8x8xi32>
    %cst_12 = arith.constant -1.000000e+04 : f32
    %cst_13 = arith.constant 0.000000e+00 : f32
    %56 = vector.broadcast %cst_12 : f32 to vector<2x8x8xf32>
    %57 = vector.broadcast %cst_13 : f32 to vector<2x8x8xf32>
    %58 = arith.select %55, %56, %57 : vector<2x8x8xi1>, vector<2x8x8xf32>
    %59 = vector.shape_cast %58 : vector<2x8x8xf32> to vector<1x2x8x8xf32>
    %60 = vector.shape_cast %59 : vector<1x2x8x8xf32> to vector<1x2x8x8xf32>
    %61 = vector.broadcast %60 : vector<1x2x8x8xf32> to vector<4x2x8x8xf32>
    %62 = vector.shape_cast %61 : vector<4x2x8x8xf32> to vector<8x8x8xf32>
    "tpu.trace_start"() <{level = 10 : i32, message = "gqd,gkd->gqk"}> : () -> ()
    %cst_14 = arith.constant dense<0.000000e+00> : vector<8x8x8xf32>
    %63 = tpu.matmul %30, %41, %cst_14 {dimension_numbers = #tpu.dot_dimension_numbers<[2], [2], [1], [1], [0, 0, 0, 1, 1, 1], [0], [0]>} : vector<8x8x8xbf16>, vector<8x8x8xbf16>, vector<8x8x8xf32> -> vector<8x8x8xf32>
    "tpu.trace_stop"() : () -> ()
    %cst_15 = arith.constant 0.353553385 : f32
    %64 = vector.broadcast %cst_15 : f32 to vector<8x8x8xf32>
    %65 = arith.mulf %63, %64 : vector<8x8x8xf32>
    %66 = arith.addf %65, %62 : vector<8x8x8xf32>
    %cst_16 = arith.constant dense<0xFF800000> : vector<8x8xf32>
    %67 = vector.multi_reduction <maximumf>, %66, %cst_16 [2] : vector<8x8x8xf32> to vector<8x8xf32>
    %68 = vector.shape_cast %67 : vector<8x8xf32> to vector<8x8x1xf32>
    %69 = vector.broadcast %68 : vector<8x8x1xf32> to vector<8x8x8xf32>
    %70 = arith.subf %66, %69 : vector<8x8x8xf32>
    %71 = math.exp %70 : vector<8x8x8xf32>
    %cst_17 = arith.constant dense<0.000000e+00> : vector<8x8xf32>
    %72 = vector.multi_reduction <add>, %71, %cst_17 [2] : vector<8x8x8xf32> to vector<8x8xf32>
    %73 = vector.shape_cast %72 : vector<8x8xf32> to vector<8x8x1xf32>
    %74 = tpu.reciprocal %73 {approx = true} : vector<8x8x1xf32> -> vector<8x8x1xf32>
    %75 = vector.broadcast %74 : vector<8x8x1xf32> to vector<8x8x8xf32>
    %76 = arith.mulf %71, %75 : vector<8x8x8xf32>
    %77 = arith.truncf %76 : vector<8x8x8xf32> to vector<8x8x8xbf16>
    "tpu.trace_start"() <{level = 10 : i32, message = "gqk,gkd->gqd"}> : () -> ()
    %cst_18 = arith.constant dense<0.000000e+00> : vector<8x8x8xf32>
    %78 = tpu.matmul %77, %52, %cst_18 {dimension_numbers = #tpu.dot_dimension_numbers<[2], [1], [1], [2], [0, 0, 0, 1, 1, 2], [0], [0]>} : vector<8x8x8xbf16>, vector<8x8x8xbf16>, vector<8x8x8xf32> -> vector<8x8x8xf32>
    "tpu.trace_stop"() : () -> ()
    %79 = vector.shape_cast %78 : vector<8x8x8xf32> to vector<4x16x8xf32>
    %80 = vector.extract_strided_slice %79 {offsets = [0, 0, 0], sizes = [1, 16, 8], strides = [1, 1, 1]} : vector<4x16x8xf32> to vector<1x16x8xf32>
    %81 = vector.shape_cast %80 : vector<1x16x8xf32> to vector<16x8xf32>
    %82 = vector.extract_strided_slice %79 {offsets = [1, 0, 0], sizes = [1, 16, 8], strides = [1, 1, 1]} : vector<4x16x8xf32> to vector<1x16x8xf32>
    %83 = vector.shape_cast %82 : vector<1x16x8xf32> to vector<16x8xf32>
    %84 = vector.extract_strided_slice %79 {offsets = [2, 0, 0], sizes = [1, 16, 8], strides = [1, 1, 1]} : vector<4x16x8xf32> to vector<1x16x8xf32>
    %85 = vector.shape_cast %84 : vector<1x16x8xf32> to vector<16x8xf32>
    %86 = vector.extract_strided_slice %79 {offsets = [3, 0, 0], sizes = [1, 16, 8], strides = [1, 1, 1]} : vector<4x16x8xf32> to vector<1x16x8xf32>
    %87 = vector.shape_cast %86 : vector<1x16x8xf32> to vector<16x8xf32>
    %88 = tpu.concatenate %81, %83, %85, %87 in 1 : vector<16x8xf32>, vector<16x8xf32>, vector<16x8xf32>, vector<16x8xf32> -> vector<16x32xf32>
    %89 = arith.truncf %88 : vector<16x32xf32> to vector<16x32xbf16>
    %c0_19 = arith.constant 0 : index
    %c0_20 = arith.constant 0 : index
    %c0_21 = arith.constant 0 : index
    %90 = vector.load %arg6[%c0_19, %c0_20, %c0_21] : memref<1x32x32xbf16, #tpu.memory_space<vmem>>, vector<1x32x32xbf16>
    %91 = vector.shape_cast %90 : vector<1x32x32xbf16> to vector<32x32xbf16>
    %cst_22 = arith.constant dense<0.000000e+00> : vector<16x32xf32>
    %92 = tpu.matmul %89, %91, %cst_22 {dimension_numbers = #tpu.dot_dimension_numbers<[1], [0], [0], [1], [0, 0, 1, 1], [], []>} : vector<16x32xbf16>, vector<32x32xbf16>, vector<16x32xf32> -> vector<16x32xf32>
    %93 = vector.broadcast %6 : vector<1x32xf32> to vector<16x32xf32>
    %94 = arith.addf %92, %93 : vector<16x32xf32>
    %95 = arith.addf %94, %13 : vector<16x32xf32>
    %cst_23 = arith.constant dense<0.000000e+00> : vector<16xf32>
    %96 = vector.multi_reduction <add>, %95, %cst_23 [1] : vector<16x32xf32> to vector<16xf32>
    %97 = vector.shape_cast %96 : vector<16xf32> to vector<16x1xf32>
    %cst_24 = arith.constant 3.200000e+01 : f32
    %98 = vector.broadcast %cst_24 : f32 to vector<16x1xf32>
    %99 = arith.divf %97, %98 : vector<16x1xf32>
    %100 = vector.broadcast %99 : vector<16x1xf32> to vector<16x32xf32>
    %101 = arith.subf %95, %100 : vector<16x32xf32>
    %102 = arith.mulf %101, %101 : vector<16x32xf32>
    %cst_25 = arith.constant dense<0.000000e+00> : vector<16xf32>
    %103 = vector.multi_reduction <add>, %102, %cst_25 [1] : vector<16x32xf32> to vector<16xf32>
    %104 = vector.shape_cast %103 : vector<16xf32> to vector<16x1xf32>
    %cst_26 = arith.constant 3.200000e+01 : f32
    %105 = vector.broadcast %cst_26 : f32 to vector<16x1xf32>
    %106 = arith.divf %104, %105 : vector<16x1xf32>
    %107 = vector.broadcast %99 : vector<16x1xf32> to vector<16x32xf32>
    %108 = arith.subf %95, %107 : vector<16x32xf32>
    %cst_27 = arith.constant 9.99999974E-6 : f32
    %109 = vector.broadcast %cst_27 : f32 to vector<16x1xf32>
    %110 = arith.addf %106, %109 : vector<16x1xf32>
    %111 = math.rsqrt %110 : vector<16x1xf32>
    %112 = vector.broadcast %111 : vector<16x1xf32> to vector<16x32xf32>
    %113 = arith.mulf %108, %112 : vector<16x32xf32>
    %114 = vector.broadcast %9 : vector<1x32xf32> to vector<16x32xf32>
    %115 = arith.mulf %113, %114 : vector<16x32xf32>
    %116 = vector.broadcast %10 : vector<1x32xf32> to vector<16x32xf32>
    %117 = arith.addf %115, %116 : vector<16x32xf32>
    %118 = arith.truncf %117 : vector<16x32xf32> to vector<16x32xbf16>
    %c0_28 = arith.constant 0 : index
    %c0_29 = arith.constant 0 : index
    %c0_30 = arith.constant 0 : index
    %119 = vector.load %arg7[%c0_28, %c0_29, %c0_30] : memref<1x32x64xbf16, #tpu.memory_space<vmem>>, vector<1x32x64xbf16>
    %120 = vector.shape_cast %119 : vector<1x32x64xbf16> to vector<32x64xbf16>
    %cst_31 = arith.constant dense<0.000000e+00> : vector<16x64xf32>
    %121 = tpu.matmul %118, %120, %cst_31 {dimension_numbers = #tpu.dot_dimension_numbers<[1], [0], [0], [1], [0, 0, 1, 1], [], []>} : vector<16x32xbf16>, vector<32x64xbf16>, vector<16x64xf32> -> vector<16x64xf32>
    %122 = vector.broadcast %7 : vector<1x64xf32> to vector<16x64xf32>
    %123 = arith.addf %121, %122 : vector<16x64xf32>
    %cst_32 = arith.constant 0.000000e+00 : f32
    %124 = vector.broadcast %cst_32 : f32 to vector<16x64xf32>
    %125 = arith.maximumf %123, %124 : vector<16x64xf32>
    %126 = arith.truncf %125 : vector<16x64xf32> to vector<16x64xbf16>
    %c0_33 = arith.constant 0 : index
    %c0_34 = arith.constant 0 : index
    %c0_35 = arith.constant 0 : index
    %127 = vector.load %arg8[%c0_33, %c0_34, %c0_35] : memref<1x64x32xbf16, #tpu.memory_space<vmem>>, vector<1x64x32xbf16>
    %128 = vector.shape_cast %127 : vector<1x64x32xbf16> to vector<64x32xbf16>
    %cst_36 = arith.constant dense<0.000000e+00> : vector<16x32xf32>
    %129 = tpu.matmul %126, %128, %cst_36 {dimension_numbers = #tpu.dot_dimension_numbers<[1], [0], [0], [1], [0, 0, 1, 1], [], []>} : vector<16x64xbf16>, vector<64x32xbf16>, vector<16x32xf32> -> vector<16x32xf32>
    %130 = vector.broadcast %8 : vector<1x32xf32> to vector<16x32xf32>
    %131 = arith.addf %129, %130 : vector<16x32xf32>
    %132 = arith.addf %131, %117 : vector<16x32xf32>
    %cst_37 = arith.constant dense<0.000000e+00> : vector<16xf32>
    %133 = vector.multi_reduction <add>, %132, %cst_37 [1] : vector<16x32xf32> to vector<16xf32>
    %134 = vector.shape_cast %133 : vector<16xf32> to vector<16x1xf32>
    %cst_38 = arith.constant 3.200000e+01 : f32
    %135 = vector.broadcast %cst_38 : f32 to vector<16x1xf32>
    %136 = arith.divf %134, %135 : vector<16x1xf32>
    %137 = vector.broadcast %136 : vector<16x1xf32> to vector<16x32xf32>
    %138 = arith.subf %132, %137 : vector<16x32xf32>
    %139 = arith.mulf %138, %138 : vector<16x32xf32>
    %cst_39 = arith.constant dense<0.000000e+00> : vector<16xf32>
    %140 = vector.multi_reduction <add>, %139, %cst_39 [1] : vector<16x32xf32> to vector<16xf32>
    %141 = vector.shape_cast %140 : vector<16xf32> to vector<16x1xf32>
    %cst_40 = arith.constant 3.200000e+01 : f32
    %142 = vector.broadcast %cst_40 : f32 to vector<16x1xf32>
    %143 = arith.divf %141, %142 : vector<16x1xf32>
    %144 = vector.broadcast %136 : vector<16x1xf32> to vector<16x32xf32>
    %145 = arith.subf %132, %144 : vector<16x32xf32>
    %cst_41 = arith.constant 9.99999974E-6 : f32
    %146 = vector.broadcast %cst_41 : f32 to vector<16x1xf32>
    %147 = arith.addf %143, %146 : vector<16x1xf32>
    %148 = math.rsqrt %147 : vector<16x1xf32>
    %149 = vector.broadcast %148 : vector<16x1xf32> to vector<16x32xf32>
    %150 = arith.mulf %145, %149 : vector<16x32xf32>
    %151 = vector.broadcast %11 : vector<1x32xf32> to vector<16x32xf32>
    %152 = arith.mulf %150, %151 : vector<16x32xf32>
    %153 = vector.broadcast %12 : vector<1x32xf32> to vector<16x32xf32>
    %154 = arith.addf %152, %153 : vector<16x32xf32>
    %c0_42 = arith.constant 0 : index
    %c0_43 = arith.constant 0 : index
    %155 = vector.load %arg13[%c0_42, %c0_43] : memref<16x32xf32, #tpu.memory_space<vmem>>, vector<16x32xf32>
    tpu.vector_store %arg13[%c0_42, %c0_43], %154 {strides = array<i32>} : memref<16x32xf32, #tpu.memory_space<vmem>>, vector<16x32xf32>,
    %c1_i32 = arith.constant 1 : i32
    %156 = arith.cmpi eq, %arg1, %c1_i32 : i32
    %157 = arith.extui %156 : i1 to i32
    %c0_i32_44 = arith.constant 0 : i32
    %158 = arith.cmpi ne, %157, %c0_i32_44 : i32
    scf.if %158 {
      %159 = arith.truncf %154 : vector<16x32xf32> to vector<16x32xbf16>
      %c0_45 = arith.constant 0 : index
      %c0_46 = arith.constant 0 : index
      %160 = vector.load %arg10[%c0_45, %c0_46] : memref<32x32xbf16, #tpu.memory_space<vmem>>, vector<32x32xbf16>
      %cst_47 = arith.constant dense<0.000000e+00> : vector<16x32xf32>
      %161 = tpu.matmul %159, %160, %cst_47 {dimension_numbers = #tpu.dot_dimension_numbers<[1], [0], [0], [1], [0, 0, 1, 1], [], []>} : vector<16x32xbf16>, vector<32x32xbf16>, vector<16x32xf32> -> vector<16x32xf32>
      %c0_48 = arith.constant 0 : index
      %c0_49 = arith.constant 0 : index
      %162 = vector.load %arg11[%c0_48, %c0_49] : memref<1x32xf32, #tpu.memory_space<vmem>>, vector<1x32xf32>
      %163 = vector.broadcast %162 : vector<1x32xf32> to vector<16x32xf32>
      %164 = arith.addf %161, %163 : vector<16x32xf32>
      %165 = vector.shape_cast %164 : vector<16x32xf32> to vector<2x8x32xf32>
      %c0_50 = arith.constant 0 : index
      %c0_51 = arith.constant 0 : index
      %c0_52 = arith.constant 0 : index
      %166 = vector.load %arg12[%c0_50, %c0_51, %c0_52] : memref<2x8x32xf32, #tpu.memory_space<vmem>>, vector<2x8x32xf32>
      tpu.vector_store %arg12[%c0_50, %c0_51, %c0_52], %165 {strides = array<i32>} : memref<2x8x32xf32, #tpu.memory_space<vmem>>, vector<2x8x32xf32>,
    } else {
    }
    return
  }
  func.func @transform_0(%arg0: i32, %arg1: i32) -> (i32, i32) {
    %c0_i32 = arith.constant 0 : i32
    %c0_i32_0 = arith.constant 0 : i32
    %c0_i32_1 = arith.constant 0 : i32
    return %c0_i32, %c0_i32_0 : i32, i32
  }
  func.func @transform_1(%arg0: i32, %arg1: i32) -> (i32, i32, i32) {
    %c0_i32 = arith.constant 0 : i32
    %c0_i32_0 = arith.constant 0 : i32
    %c0_i32_1 = arith.constant 0 : i32
    return %arg0, %c0_i32, %c0_i32_0 : i32, i32, i32
  }
  func.func @transform_2(%arg0: i32, %arg1: i32) -> (i32, i32, i32) {
    %c0_i32 = arith.constant 0 : i32
    %c0_i32_0 = arith.constant 0 : i32
    %c0_i32_1 = arith.constant 0 : i32
    return %arg0, %c0_i32, %c0_i32_0 : i32, i32, i32
  }
  func.func @transform_3(%arg0: i32, %arg1: i32) -> (i32, i32, i32) {
    %c0_i32 = arith.constant 0 : i32
    %c0_i32_0 = arith.constant 0 : i32
    %c0_i32_1 = arith.constant 0 : i32
    return %arg1, %c0_i32, %c0_i32_0 : i32, i32, i32
  }
  func.func @transform_4(%arg0: i32, %arg1: i32) -> (i32, i32, i32) {
    %c0_i32 = arith.constant 0 : i32
    %c0_i32_0 = arith.constant 0 : i32
    %c0_i32_1 = arith.constant 0 : i32
    return %arg1, %c0_i32, %c0_i32_0 : i32, i32, i32
  }
  func.func @transform_5(%arg0: i32, %arg1: i32) -> (i32, i32, i32) {
    %c0_i32 = arith.constant 0 : i32
    %c0_i32_0 = arith.constant 0 : i32
    %c0_i32_1 = arith.constant 0 : i32
    return %arg1, %c0_i32, %c0_i32_0 : i32, i32, i32
  }
  func.func @transform_6(%arg0: i32, %arg1: i32) -> (i32, i32, i32) {
    %c0_i32 = arith.constant 0 : i32
    %c0_i32_0 = arith.constant 0 : i32
    %c0_i32_1 = arith.constant 0 : i32
    return %arg1, %c0_i32, %c0_i32_0 : i32, i32, i32
  }
  func.func @transform_7(%arg0: i32, %arg1: i32) -> (i32, i32, i32) {
    %c0_i32 = arith.constant 0 : i32
    %c0_i32_0 = arith.constant 0 : i32
    %c0_i32_1 = arith.constant 0 : i32
    return %arg1, %c0_i32, %c0_i32_0 : i32, i32, i32
  }
  func.func @transform_8(%arg0: i32, %arg1: i32) -> (i32, i32) {
    %c0_i32 = arith.constant 0 : i32
    %c0_i32_0 = arith.constant 0 : i32
    %c0_i32_1 = arith.constant 0 : i32
    return %c0_i32, %c0_i32_0 : i32, i32
  }
  func.func @transform_9(%arg0: i32, %arg1: i32) -> (i32, i32) {
    %c0_i32 = arith.constant 0 : i32
    %c0_i32_0 = arith.constant 0 : i32
    %c0_i32_1 = arith.constant 0 : i32
    return %c0_i32, %c0_i32_0 : i32, i32
  }
  func.func @transform_10(%arg0: i32, %arg1: i32) -> (i32, i32, i32) {
    %c0_i32 = arith.constant 0 : i32
    %c0_i32_0 = arith.constant 0 : i32
    %c0_i32_1 = arith.constant 0 : i32
    return %arg0, %c0_i32, %c0_i32_0 : i32, i32, i32
  }
}

</mosaic_0001>

<bundles_post_ra>
// kernel: tpu_custom_call.1
= control target key start
LH: loop header
LB: loop body
LE: loop exit
PB: predicated region body
PF: predicated region fallthrough
CT: control target
= control target key end

     0   :  { %s2534_s0 = inlined_call_operand.hbm [shape: f32[16,32], index: 0, kind: input, shape index: {}]   ;;  %s2535_s1 = inlined_call_operand.hbm [shape: f32[2,8,32], index: 1, kind: input, shape index: {}]   ;;  %s2536_s2 = inlined_call_operand.hbm [shape: s32[2,8,8], index: 2, kind: input, shape index: {}]   ;;  %s2537_s3 = inlined_call_operand.vmem [shape: bf16[2,32,96], index: 3, kind: input, shape index: {}]   ;;  %s2538_s4 = inlined_call_operand.vmem [shape: bf16[2,32,32], index: 4, kind: input, shape index: {}]   ;;  %s2539_s5 = inlined_call_operand.vmem [shape: bf16[2,32,64], index: 5, kind: input, shape index: {}]   ;;  %s2540_s6 = inlined_call_operand.vmem [shape: bf16[2,64,32], index: 6, kind: input, shape index: {}]   ;;  %s2541_s7 = inlined_call_operand.hbm [shape: f32[2,8,96], index: 7, kind: input, shape index: {}]   ;;  %s2542_s8 = inlined_call_operand.hbm [shape: bf16[32,32], index: 8, kind: input, shape index: {}]   ;;  %s2543_s9 = inlined_call_operand.vmem [shape: f32[1,32], index: 9, kind: input, shape index: {}]   ;;  %s2544_s10 = inlined_call_operand.hbm [shape: f32[2,8,32], index: 10, kind: output, shape index: {}]  }
   0x1   :  { %2545 = sst [smem:[#allocation18_spill]] %s2534_s0 }
   0x2   :  { %2546 = sst [smem:[#allocation19_spill]] %s2535_s1 }
   0x3   :  { %2547 = sst [smem:[#allocation20_spill]] %s2542_s8 }
   0x4   :  { %2548 = sst [smem:[#allocation21_spill]] %s2544_s10 }
   0x5   :  { %15 = vsyncpa [#allocation4], 0 }
   0x6   :  { %16 = vsyncpa [#allocation7], 0 }
   0x7   :  { %17 = vsyncpa [#allocation10], 0 }
   0x8   :  { %19 = vsyncpa [#allocation10 + $0x1], 0 }
   0x9   :  { %20 = vsyncpa [#allocation5], 0  ;;  %s2196_s13 = smov 0   ;;  %s2198_s14 = smov 0  }
   0xa   :  { %s2200_s15 = smov 0   ;;  %s2202_s16 = smov 0  }
   0xb   :  { %s2204_s17 = smov 0   ;;  %s2206_s18 = smov 0  }
   0xc LB: > { %s2549_s1 = sld [smem:[#allocation19_spill]]  ;;  %s2230_s22 = sadd.s32 4294967295, %s2119_s18   ;;  %s2119_s18 = sphi %s2206_s18, %s26_s18   ;;  %s2115_s17 = sphi %s2204_s17, %s2563_s17   ;;  %s2111_s16 = sphi %s2202_s16, %s2562_s16   ;;  %s2107_s15 = sphi %s2200_s15, %s2561_s15   ;;  %s2103_s14 = sphi %s2198_s14, %s2560_s14   ;;  %s2099_s13 = sphi %s2196_s13, %s2559_s13  }
   0xd   : > { %p1586_p0 = scmp.ge.s32.totalorder %s2119_s18, 1  ;;  %p236_p1 = scmp.eq.s32.totalorder %s2230_s22, 0 }
   0xe   : > { %p314_p2 = scmp.lt.s32.totalorder %s2119_s18, 3  ;;  %s2121_s24 = smov [#allocation6]  }
   0xf   : > { %s342_s25 = sshll.u32 %s2121_s24, 4  ;;  %s2551_s8 = sld [smem:[#allocation20_spill]]  ;;  %s343_s25 = int_to_ptr.vmem [resolvable:$true] %s342_s25 }
  0x10   : > { %p2235_p3 = pnand %p1586_p0, %p314_p2  ;;  %s2122_s30 = smov [#allocation11]  }
  0x11   : > { %s373_s11 = sshll.u32 %s2122_s30, 4  ;;  %s2123_s12 = smov 128   ;;  %s374_s11 = int_to_ptr.vmem [resolvable:$true] %s373_s11 }
  0x12   : > { %s340_s21 = sshll.u32 %s2549_s1, 4  ;;  %p1721_p4 = pneg %p2235_p3  ;;  %s341_s21 = int_to_ptr.hbm [resolvable:$true] %s340_s21 }
  0x13   : > { %s2124_s19 = smov 8   ;;  %s2125_s20 = smov 64  }
  0x14   : > { %p2246_p5 = pnand %p1721_p4, %p236_p1  ;;  %s2126_s24 = smov 4  }
  0x15   : > { %s371_s28 = sshll.u32 %s2551_s8, 4  ;;  %s2553_s0 = sld [smem:[#allocation18_spill]]  ;;  %s372_s28 = int_to_ptr.hbm [resolvable:$true] %s371_s28 }
  0x16   : > { %1727 = dma.hbm_to_vmem [thread:$0]  (!%p2246_p5), %s341_s21, 256, %s343_s25, [#allocation7], %s2123_s12, %s2123_s12, %s2124_s19  }
  0x17   : > { %1733 = dma.hbm_to_vmem [thread:$0]  (!%p2246_p5), %s372_s28, 256, %s374_s11, [#allocation10], %s2125_s20, %s2125_s20, %s2126_s24  }
  0x18   : > { %s357_s21 = sshll.u32 %s2536_s2, 4  ;;  %s2127_s25 = smov [#allocation3]   ;;  %s358_s21 = int_to_ptr.hbm [resolvable:$true] %s357_s21 }
  0x19   : > { %s328_s10 = sshll.u32 %s2127_s25, 4  ;;  %s2128_s28 = smov [#allocation8]   ;;  %s329_s10 = int_to_ptr.vmem [resolvable:$true] %s328_s10 }
  0x1a   : > { %s359_s11 = sshll.u32 %s2128_s28, 4  ;;  %s35_s8 = sadd.s32 1, %s2115_s17  ;;  %s360_s11 = int_to_ptr.vmem [resolvable:$true] %s359_s11 }
  0x1b   : > { %s326_s1 = sshll.u32 %s2553_s0, 4  ;;  %p36_p6 = scmp.ge.s32.totalorder %s35_s8, 2  ;;  %s327_s1 = int_to_ptr.hbm [resolvable:$true] %s326_s1 }
  0x1c   : > { %1724 = dma.hbm_to_vmem [thread:$0]  (!%p2246_p5), %s327_s1, 128, %s329_s10, [#allocation4]  }
  0x1d   : > { %1730 = dma.hbm_to_vmem [thread:$0]  (!%p2246_p5), %s358_s21, 256, %s360_s11, [#allocation7], %s2123_s12, %s2123_s12, %s2124_s19  }
  0x1e   : > { %p229_p7 = scmp.ne.s32.totalorder %s2107_s15, %s2103_s14  ;;  %p230_p8 = scmp.eq.s32.totalorder %s2119_s18, 0 }
  0x1f   : > { %p235_p9 = scmp.ne.s32.totalorder %s2103_s14, %s2099_s13  ;;  %s2565_s8 = smov (%p36_p6, %s35_s8), 0 }
  0x20   : > { %s222_s20 = sadd.s32 1, %s2107_s15  ;;  %s219_s10 = ssub.s32 %s2115_s17, %s2565_s8 }
  0x21   : > { %p2275_p10 = por %p236_p1, %p235_p9  ;;  %p2281_p11 = por %p230_p8, %p229_p7 }
  0x22   : > { %p220_p12 = scmp.eq.s32.totalorder %s219_s10, 0  ;;  %p1742_p13 = scmp.lt.s32.totalorder %s2119_s18, 2 }
  0x23   : > { %s422_s12 = sand.u32 1, %s2119_s18   ;;  %s424_s19 = sand.u32 1, %s2107_s15  }
  0x24   : > { %s2289_s13 = scalar_select %p220_p12, %s2107_s15, %s222_s20  }
  0x25   : > { %s1592_s24 = sshll.u32 %s424_s19, 3  ;;  %s1593_s26 = sshll.u32 %s2115_s17, 3 }
  0x26   : > { %s430_s21 = scalar_lea.hbm %s2541_s7, %s1593_s26  ;;  %s426_s28 = scalar_lea.vmem [#allocation9], %s1592_s24 }
  0x27   : > { %s432_s25 = sshll.u32 %s430_s21, 4  ;;  %s434_s11 = sshll.u32 %s426_s28, 4  ;;  %s433_s25 = int_to_ptr.hbm [resolvable:$true] %s432_s25  ;;  %s435_s11 = int_to_ptr.vmem [resolvable:$true] %s434_s11 }
  0x28   : > { %p1735_p0 = pnand %p1742_p13, %p2281_p11  ;;  %s423_s0 = scalar_lea.sflag [#allocation10], %s422_s12 }
  0x29   : > { %443 = sbr.rel (%p2235_p3) target bundleno = 2250 (0x8ca), region = 60 }
  0x2a   : > { %1737 = dma.hbm_to_vmem [thread:$0]  (!%p1735_p0), %s433_s25, 128, %s435_s11, %s423_s0  }
  0x2e   : > { %2078 = dma.done.wait (%p236_p1), [#allocation4], 128  }
  0x2f   : > { %2080 = vsyncadd (%p236_p1), [#allocation4], 4294967168 }
  0x30   : > { %2082 = dma.done.wait (%p236_p1), [#allocation7], 512  }
  0x31   : > { %2084 = vsyncadd (%p236_p1), [#allocation7], 4294966784  ;;  %s460_s20 = sand.u32 1, %s2230_s22   ;;  %s462_s0 = sand.u32 1, %s2103_s14  }
  0x32   : > { %s2309_s10 = sshll.u32 %s462_s0, 3  ;;  %s461_s23 = scalar_lea.sflag [#allocation10], %s460_s20 }
  0x33   : > { %2086 = dma.done.wait (%p2275_p10), %s461_s23, 128  }
  0x34   : > { %2088 = vsyncadd (%p2275_p10), %s461_s23, 4294967168 }
  0x35   : > { %2090 = dma.done.wait (%p236_p1), [#allocation10], 256  }
  0x36   : > { %2092 = vsyncadd (%p236_p1), [#allocation10], 4294967040  ;;  %p524_p2 = scmp.lt.s32.totalorder %s2111_s16, 1  ;;  %p1608_p1 = scmp.ne.s32.totalorder %s2111_s16, 0 }
  0x38   : > { %s525_s12 = scalar_select %p524_p2, %s2111_s16, 1 }
  0x39   : > { %549 = sbr.rel (%p1608_p1) target bundleno = 67 (0x43), region = 84 }
  0x3a   : > { %s1683_s19 = sshll.u32 %s525_s12, 4  ;;  %s1686_s24 = sshll.u32 %s525_s12, 5 }
  0x3b   : > { %s528_s30 = scalar_lea.vmem %s2537_s3, %s1683_s19  ;;  %s2328_s1 = scalar_lea.vmem %s2538_s4, %s1683_s19 }
  0x3c   : > { %s2333_s20 = scalar_lea.vmem %s2539_s5, %s1683_s19  ;;  %s2338_s29 = scalar_lea.vmem %s2540_s6, %s1686_s24 }
  0x3e   : > { %v550_v0 = vld [vmem:[#allocation6] sm:$0xff]  ;;  %v552_v1 = vld [vmem:[#allocation3] sm:$0xff]  ;;  %vm555_vm0 = vcmask 261120   ;;  %v551_v2 = vld [vmem:[#allocation6 + $0x8] sm:$0xff] }
  0x3f   : > { %v553_v3 = vadd.f32 %v552_v1, %v550_v0  ;;  %v554_v4 = vadd.f32 %v552_v1, %v551_v2 }
  0x41   : > { %556 = vst.msk [vmem:[#allocation2] sm:$0xff] %vm555_vm0, %v553_v3 }
  0x42   : > { %557 = vst.msk [vmem:[#allocation2 + $0x8] sm:$0xff] %vm555_vm0, %v554_v4 }
  0x43 PF: > { %v1688_v5 = vld [vmem:[%s528_s30 + $0x8] sm:$0xff]  ;;  %v1687_v6 = vld [vmem:[%s528_s30] sm:$0xff]  ;;  %vm579_vm1 = vcmask 261120   ;;  %s2556_s12 = scalar_lea.vmem [#allocation9], %s2309_s10  ;;  %s2129_s19 = smov 112   ;;  %vm636_vm2 = vcmask 64512  }
  0x44   : > { %589 = vmatpush.bf16.msra.mxu0 %v1688_v5  ;;  %v2350_v10 = vld [vmem:[%s2556_s12] sm:$0xff]  ;;  %s2130_s24 = smov 120   ;;  %s2131_s26 = smov 104   ;;  %v625_v51 = vld [vmem:[#allocation8] sm:$0xff]  ;;  %v2134_v56 = vmov 0.0   ;;  %vm941_vm4 = vcmask 1043456  }
  0x45   : > { %v566_v11 = vperm.slane %v2350_v10, 0  ;;  %s2132_s10 = smov 96   ;;  %s2133_s27 = smov 64   ;;  %vm627_vm3 = vcmp.eq.s32.totalorder %v625_v51, 0  ;;  %vm1131_vm6 = vcmask 130048   ;;  %vm1134_vm7 = vcmask 195584  }
  0x46   : > { %v2391_v57 = vsel %vm627_vm3, -10000.0, %v2134_v56  ;;  %s2135_s30 = smov 8   ;;  %s2136_s21 = smov 16   ;;  %vm1302_vm15 = vcmask 523264  }
  0x47   : > { %s2137_s25 = smov 24   ;;  %p1669_p3 = scmp.ne.s32.totalorder %s2111_s16, 1 }
  0x48   : > { %v2341_v7 = vld [vmem:[#allocation2] sm:$0xff]  ;;  %590 = vmatpush.bf16.msra.mxu0 %v1687_v6 }
  0x49   : > { %v2343_v8 = vld [vmem:[#allocation2 + $0x8] sm:$0xff] }
  0x4a   : > { %v561_v9 = vpack.c.bf16 %v2343_v8, %v2341_v7 }
  0x4c   : > { %1617 = vmatmul.msk.bf16.vlgmr.msra.gmra.mxu0 %vm579_vm1, %v561_v9 }
  0xc9   : > { %v592_v12 = vpop.f32.mrf.mxu0 }
  0xca   : > { %v593_v13 = vadd.f32 %v592_v12, %v566_v11 }
  0xcc   : > { %605 = vrot.lane.b32.xlu2 %v593_v13, %s2129_s19  ;;  %599 = vrot.lane.b32.xlu0 %v593_v13, %s2130_s24  ;;  %v617_v16 = vpack.c.bf16 %v593_v13, %v593_v13 }
  0xce   : > { %v632_v18 = vunpack.c.l.b16 %v617_v16 }
  0xd0   : > { %v633_v20 = vpack.c.b16 %v632_v18, %v632_v18 }
  0xd1   : > { %v594_v14 = vpop.f32.mrf.mxu0 }
  0xd2   : > { %v595_v15 = vadd.f32 %v594_v14, %v566_v11 }
  0xd4   : > { %607 = vrot.lane.b32.xlu1 %v595_v15, %s2129_s19  ;;  %613 = vrot.lane.b32.xlu2 %v595_v15, %s2131_s26  ;;  %v618_v17 = vpack.c.bf16 %v595_v15, %v595_v15 }
  0xd5   : > { %601 = vrot.lane.b32.xlu0 %v595_v15, %s2130_s24  ;;  %v626_v15 = vld [vmem:[#allocation8 + $0x8] sm:$0xff] }
  0xd6   : > { %v657_v19 = vunpack.c.l.b16 %v618_v17  ;;  %vm628_vm5 = vcmp.eq.s32.totalorder %v626_v15, 0 }
  0xd8   : > { %v658_v21 = vpack.c.b16 %v657_v19, %v657_v19 }
  0xdc   : > { %611 = vrot.lane.b32.xlu1 %v593_v13, %s2131_s26  ;;  %634 = vrot.lane.b32.xlu2 %v633_v20, %s2132_s10 }
  0xdd   : > { %659 = vrot.lane.b32.xlu0 %v658_v21, %s2132_s10 }
 0x126   : > { %v606_v22 = vpop.permute.xlu2 %605 }
 0x127   : > { %v2362_v38 = vpack.c.bf16 %v606_v22, %v606_v22 }
 0x129   : > { %v729_v44 = vunpack.c.l.b16 %v2362_v38 }
 0x12b   : > { %v2377_v49 = vpack.c.b16 %v729_v44, %v729_v44 }
 0x12e   : > { %v614_v23 = vpop.permute.xlu2 %613 }
 0x12f   : > { %v2358_v36 = vpack.c.bf16 %v614_v23, %v614_v23 }
 0x131   : > { %v801_v41 = vunpack.c.l.b16 %v2358_v36 }
 0x133   : > { %v2373_v47 = vpack.c.b16 %v801_v41, %v801_v41 }
 0x136   : > { %v635_v24 = vpop.permute.xlu2 %634 }
 0x137   : > { %v641_v25 = vsel %vm636_vm2, %v635_v24, 0 }
 0x138   : > { %650 = vmatpush.bf16.xpose.msra.mxu1 %v641_v25 }
 0x13e   : > { %v600_v26 = vpop.permute.xlu0 %599 }
 0x13f   : > { %v619_v27 = vpack.c.bf16 %v600_v26, %v600_v26  ;;  %1618 = vmatmul.msk.bf16.vlgmr.msra.gmra.mxu1 %vm636_vm2, %v617_v16 }
 0x141   : > { %v681_v28 = vunpack.c.l.b16 %v619_v27 }
 0x143   : > { %v682_v29 = vpack.c.b16 %v681_v28, %v681_v28 }
 0x145   : > { %683 = vrot.lane.b32.xlu1 %v682_v29, %s2132_s10 }
 0x146   : > { %v608_v30 = vpop.permute.xlu1 %607 }
 0x147   : > { %v622_v31 = vpack.c.bf16 %v608_v30, %v608_v30  ;;  %v602_v32 = vpop.permute.xlu0 %601 }
 0x148   : > { %v620_v33 = vpack.c.bf16 %v602_v32, %v602_v32 }
 0x149   : > { %v753_v34 = vunpack.c.l.b16 %v622_v31 }
 0x14a   : > { %v705_v35 = vunpack.c.l.b16 %v620_v33 }
 0x14b   : > { %v2360_v37 = vpack.c.b16 %v753_v34, %v753_v34 }
 0x14c   : > { %v2364_v39 = vpack.c.b16 %v705_v35, %v705_v35 }
 0x14d   : > { %755 = vrot.lane.b32.xlu1 %v2360_v37, %s2132_s10 }
 0x14e   : > { %707 = vrot.lane.b32.xlu0 %v2364_v39, %s2132_s10  ;;  %v612_v40 = vpop.permute.xlu1 %611 }
 0x14f   : > { %v623_v42 = vpack.c.bf16 %v612_v40, %v612_v40  ;;  %v660_v43 = vpop.permute.xlu0 %659 }
 0x150   : > { %v665_v45 = vsel %vm636_vm2, %v660_v43, 0 }
 0x151   : > { %v777_v46 = vunpack.c.l.b16 %v623_v42  ;;  %674 = vmatpush.bf16.xpose.msra.mxu2 %v665_v45 }
 0x153   : > { %v2375_v48 = vpack.c.b16 %v777_v46, %v777_v46 }
 0x155   : > { %803 = vrot.lane.b32.xlu1 %v2373_v47, %s2132_s10  ;;  %779 = vrot.lane.b32.xlu2 %v2375_v48, %s2132_s10 }
 0x156   : > { %731 = vrot.lane.b32.xlu0 %v2377_v49, %s2132_s10 }
 0x158   : > { %1619 = vmatmul.msk.bf16.vlgmr.msra.gmra.mxu2 %vm636_vm2, %v618_v17  ;;  %v630_v17 = vsel %vm628_vm5, -10000.0, %v2134_v56 }
 0x15d   : > { %958 = vrot.lane.b32.xlu1 %v658_v21, %s2133_s27  ;;  %979 = vrot.lane.b32.xlu2 %v682_v29, %s2133_s27 }
 0x15e   : > { %936 = vrot.lane.b32.xlu0 %v633_v20, %s2133_s27 }
 0x1af   : > { %v780_v50 = vpop.permute.xlu2 %779 }
 0x1b0   : > { %v785_v54 = vsel %vm636_vm2, %v780_v50, 0 }
 0x1b7   : > { %v684_v52 = vpop.permute.xlu1 %683  ;;  %v980_v58 = vpop.permute.xlu2 %979 }
 0x1b8   : > { %v689_v53 = vsel %vm636_vm2, %v684_v52, 0  ;;  %v985_v62 = vsel %vm941_vm4, %v980_v58, 0 }
 0x1b9   : > { %698 = vmatpush.bf16.xpose.msra.mxu3 %v689_v53 }
 0x1bc   : > { %v652_v55 = vpop.f32.mrf.mxu1 }
 0x1bd   : > { %v824_v59 = vmul.f32 0.35355338, %v652_v55 }
 0x1bf   : > { %v756_v60 = vpop.permute.xlu1 %755  ;;  %v832_v61 = vadd.f32 %v824_v59, %v2391_v57 }
 0x1c0   : > { %v708_v63 = vpop.permute.xlu0 %707  ;;  %1620 = vmatmul.msk.bf16.vlgmr.msra.gmra.mxu3 %vm636_vm2, %v619_v27  ;;  %v761_v0 = vsel %vm636_vm2, %v756_v60, 0 }
 0x1c1   : > { %794 = vmatpush.bf16.xpose.msrb.mxu3 %v785_v54  ;;  %v713_v1 = vsel %vm636_vm2, %v708_v63, 0  ;;  %770 = vmatpush.bf16.xpose.msrb.mxu2 %v761_v0  ;;  %v840_v2 = vsel %vm636_vm2, %v832_v61, -inf }
 0x1c2   : > { %722 = vmatpush.bf16.xpose.msrb.mxu0 %v713_v1  ;;  %841 = vmax.xlane.f32.xlu1 %v840_v2 }
 0x1c4   : > { %v654_v3 = vpop.f32.mrf.mxu1 }
 0x1c7   : > { %v804_v4 = vpop.permute.xlu1 %803 }
 0x1c8   : > { %v809_v5 = vsel %vm636_vm2, %v804_v4, 0  ;;  %v732_v6 = vpop.permute.xlu0 %731  ;;  %1623 = vmatmul.msk.bf16.vlgmr.msrb.gmra.mxu2 %vm636_vm2, %v622_v31 }
 0x1c9   : > { %994 = vmatpush.bf16.msra.mxu3 %v985_v62  ;;  %1621 = vmatmul.msk.bf16.vlgmr.msrb.gmra.mxu0 %vm636_vm2, %v620_v33  ;;  %v737_v9 = vsel %vm636_vm2, %v732_v6, 0 }
 0x1ca   : > { %746 = vmatpush.bf16.xpose.msrb.mxu1 %v737_v9  ;;  %818 = vmatpush.bf16.xpose.msra.mxu0 %v809_v5 }
 0x1cf   : > { %v959_v11 = vpop.permute.xlu1 %958 }
 0x1d0   : > { %v964_v12 = vsel %vm941_vm4, %v959_v11, 0  ;;  %v937_v13 = vpop.permute.xlu0 %936  ;;  %1624 = vmatmul.msk.bf16.vlgmr.msrb.gmra.mxu3 %vm636_vm2, %v623_v42 }
 0x1d1   : > { %v943_v14 = vsel %vm941_vm4, %v937_v13, 0  ;;  %1622 = vmatmul.msk.bf16.vlgmr.msrb.gmra.mxu1 %vm636_vm2, %v2362_v38  ;;  %973 = vmatpush.bf16.msra.mxu2 %v964_v12 }
 0x1d2   : > { %952 = vmatpush.bf16.msra.mxu1 %v943_v14 }
 0x1d9   : > { %1625 = vmatmul.msk.bf16.vlgmr.msra.gmra.mxu0 %vm636_vm2, %v2358_v36 }
 0x1db   : > { %v676_v16 = vpop.f32.mrf.mxu2  ;;  %1000 = vrot.lane.b32.xlu1 %v2364_v39, %s2133_s27 }
 0x1dc   : > { %v825_v18 = vmul.f32 0.35355338, %v676_v16 }
 0x1de   : > { %v833_v19 = vadd.f32 %v825_v18, %v630_v17 }
 0x1e0   : > { %v843_v20 = vsel %vm636_vm2, %v833_v19, -inf }
 0x1e1   : > { %844 = vmax.xlane.f32.xlu2 %v843_v20 }
 0x1e3   : > { %v678_v21 = vpop.f32.mrf.mxu2 }
 0x235   : > { %v842_v22 = vpop.xlane.xlu1 %841 }
 0x236   : > { %v864_v23 = vsub.f32 %v832_v61, %v842_v22 }
 0x238   : > { %v872_v26 = vmul.f32 1.442695, %v864_v23 }
 0x23a   : > { %1832 = vpow2.f32 %v872_v26 }
 0x240   : > { %v1833_v41 = vpop.eup %1832 }
 0x241   : > { %v888_v45 = vsel %vm636_vm2, %v1833_v41, 0.0 }
 0x243   : > { %v700_v24 = vpop.f32.mrf.mxu3 }
 0x244   : > { %v826_v25 = vmul.f32 0.35355338, %v700_v24 }
 0x246   : > { %v724_v27 = vpop.f32.mrf.mxu0  ;;  %v2414_v28 = vadd.f32 %v826_v25, %v2391_v57 }
 0x247   : > { %v827_v29 = vmul.f32 0.35355338, %v724_v27 }
 0x248   : > { %v846_v30 = vsel %vm636_vm2, %v2414_v28, -inf }
 0x249   : > { %847 = vmax.xlane.f32.xlu0 %v846_v30  ;;  %v835_v31 = vadd.f32 %v827_v29, %v630_v17 }
 0x24b   : > { %v702_v32 = vpop.f32.mrf.mxu3  ;;  %v772_v33 = vpop.f32.mrf.mxu2  ;;  %v849_v34 = vsel %vm636_vm2, %v835_v31, -inf }
 0x24c   : > { %850 = vmax.xlane.f32.xlu2 %v849_v34  ;;  %v829_v43 = vmul.f32 0.35355338, %v772_v33 }
 0x24d   : > { %v1001_v35 = vpop.permute.xlu1 %1000 }
 0x24e   : > { %v726_v36 = vpop.f32.mrf.mxu0  ;;  %v1006_v38 = vsel %vm941_vm4, %v1001_v35, 0  ;;  %v748_v39 = vpop.f32.mrf.mxu1  ;;  %v837_v59 = vadd.f32 %v829_v43, %v630_v17 }
 0x24f   : > { %v828_v40 = vmul.f32 0.35355338, %v748_v39  ;;  %1015 = vmatpush.bf16.msrb.mxu0 %v1006_v38 }
 0x250   : > { %v855_v62 = vsel %vm636_vm2, %v837_v59, -inf }
 0x251   : > { %v836_v42 = vadd.f32 %v828_v40, %v2391_v57 }
 0x253   : > { %v774_v44 = vpop.f32.mrf.mxu2  ;;  %v852_v46 = vsel %vm636_vm2, %v836_v42, -inf  ;;  %v796_v50 = vpop.f32.mrf.mxu3 }
 0x254   : > { %889 = vadd.xlane.f32.xlu2 %v888_v45  ;;  %853 = vmax.xlane.f32.xlu1 %v852_v46  ;;  %v830_v51 = vmul.f32 0.35355338, %v796_v50  ;;  %v845_v52 = vpop.xlane.xlu2 %844 }
 0x255   : > { %v865_v53 = vsub.f32 %v833_v19, %v845_v52 }
 0x256   : > { %v750_v54 = vpop.f32.mrf.mxu1  ;;  %v820_v55 = vpop.f32.mrf.mxu0  ;;  %v838_v56 = vadd.f32 %v830_v51, %v2391_v57 }
 0x257   : > { %v874_v58 = vmul.f32 1.442695, %v865_v53  ;;  %v831_v61 = vmul.f32 0.35355338, %v820_v55 }
 0x258   : > { %v858_v60 = vsel %vm636_vm2, %v838_v56, -inf }
 0x259   : > { %1834 = vpow2.f32 %v874_v58  ;;  %859 = vmax.xlane.f32.xlu0 %v858_v60  ;;  %v839_v2 = vadd.f32 %v831_v61, %v630_v17 }
 0x25b   : > { %v798_v63 = vpop.f32.mrf.mxu3  ;;  %v861_v4 = vsel %vm636_vm2, %v839_v2, -inf }
 0x25c   : > { %856 = vmax.xlane.f32.xlu2 %v855_v62 }
 0x25e   : > { %v822_v0 = vpop.f32.mrf.mxu0 }
 0x25f   : > { %v1835_v1 = vpop.eup %1834 }
 0x260   : > { %v891_v3 = vsel %vm636_vm2, %v1835_v1, 0.0 }
 0x261   : > { %892 = vadd.xlane.f32.xlu0 %v891_v3 }
 0x264   : > { %862 = vmax.xlane.f32.xlu2 %v861_v4 }
 0x27c   : > { %1042 = vrot.lane.b32.xlu2 %v2360_v37, %s2133_s27 }
 0x2bc   : > { %v848_v9 = vpop.xlane.xlu0 %847 }
 0x2bd   : > { %v866_v15 = vsub.f32 %v2414_v28, %v848_v9 }
 0x2bf   : > { %v851_v57 = vpop.xlane.xlu2 %850  ;;  %v876_v20 = vmul.f32 1.442695, %v866_v15 }
 0x2c0   : > { %v867_v5 = vsub.f32 %v835_v31, %v851_v57 }
 0x2c2   : > { %v878_v6 = vmul.f32 1.442695, %v867_v5 }
 0x2c4   : > { %1836 = vpow2.f32 %v878_v6 }
 0x2c7   : > { %v854_v11 = vpop.xlane.xlu1 %853  ;;  %v890_v12 = vpop.xlane.xlu2 %889 }
 0x2c8   : > { %v868_v13 = vsub.f32 %v836_v42, %v854_v11  ;;  %1838 = vrcp.f32 %v890_v12 }
 0x2ca   : > { %v1837_v14 = vpop.eup %1836  ;;  %v880_v16 = vmul.f32 1.442695, %v868_v13 }
 0x2cb   : > { %v897_v17 = vsel %vm636_vm2, %v1837_v14, 0.0 }
 0x2cc   : > { %1840 = vpow2.f32 %v880_v16  ;;  %898 = vadd.xlane.f32.xlu0 %v897_v17  ;;  %v860_v18 = vpop.xlane.xlu0 %859 }
 0x2cd   : > { %v870_v19 = vsub.f32 %v838_v56, %v860_v18 }
 0x2ce   : > { %v1839_v37 = vpop.eup %1838 }
 0x2cf   : > { %v920_v21 = vmul.f32 %v1839_v37, %v1833_v41  ;;  %v884_v22 = vmul.f32 1.442695, %v870_v19  ;;  %v857_v23 = vpop.xlane.xlu2 %856 }
 0x2d0   : > { %v869_v24 = vsub.f32 %v837_v59, %v857_v23 }
 0x2d1   : > { %v928_v25 = vpack.c.bf16 %v920_v21, %v920_v21  ;;  %1842 = vpow2.f32 %v884_v22 }
 0x2d2   : > { %v2432_v26 = vpop.eup %1840  ;;  %1844 = vpow2.f32 %v876_v20  ;;  %v882_v27 = vmul.f32 1.442695, %v869_v24 }
 0x2d3   : > { %1626 = vmatmul.msk.bf16.vlgmr.msra.gmra.mxu1 %vm636_vm2, %v928_v25  ;;  %v900_v28 = vsel %vm636_vm2, %v2432_v26, 0.0 }
 0x2d4   : > { %1846 = vpow2.f32 %v882_v27  ;;  %901 = vadd.xlane.f32.xlu1 %v900_v28  ;;  %v893_v29 = vpop.xlane.xlu0 %892 }
 0x2d5   : > { %1848 = vrcp.f32 %v893_v29 }
 0x2d7   : > { %v1843_v30 = vpop.eup %1842  ;;  %v863_v31 = vpop.xlane.xlu2 %862 }
 0x2d8   : > { %v1845_v32 = vpop.eup %1844  ;;  %v871_v33 = vsub.f32 %v839_v2, %v863_v31  ;;  %v906_v34 = vsel %vm636_vm2, %v1843_v30, 0.0 }
 0x2d9   : > { %907 = vadd.xlane.f32.xlu2 %v906_v34  ;;  %v894_v39 = vsel %vm636_vm2, %v1845_v32, 0.0  ;;  %v1690_v34 = vld [vmem:[%s2328_s1 + $0x8] sm:$0xff] }
 0x2da   : > { %v1847_v35 = vpop.eup %1846  ;;  %v886_v36 = vmul.f32 1.442695, %v871_v33 }
 0x2db   : > { %v1849_v38 = vpop.eup %1848  ;;  %v903_v40 = vsel %vm636_vm2, %v1847_v35, 0.0 }
 0x2dc   : > { %v921_v41 = vmul.f32 %v1849_v38, %v1835_v1  ;;  %1850 = vpow2.f32 %v886_v36  ;;  %895 = vadd.xlane.f32.xlu1 %v894_v39  ;;  %904 = vadd.xlane.f32.xlu0 %v903_v40 }
 0x2de   : > { %v929_v42 = vpack.c.bf16 %v921_v41, %v921_v41 }
 0x2df   : > { %v1043_v43 = vpop.permute.xlu2 %1042 }
 0x2e0   : > { %v1048_v44 = vsel %vm941_vm4, %v1043_v43, 0  ;;  %1627 = vmatmul.msk.bf16.vlgmr.msra.gmra.mxu2 %vm636_vm2, %v929_v42 }
 0x2e1   : > { %1057 = vmatpush.bf16.msrb.mxu2 %v1048_v44 }
 0x2e2   : > { %v1851_v45 = vpop.eup %1850 }
 0x2e3   : > { %v909_v46 = vsel %vm636_vm2, %v1851_v45, 0.0 }
 0x2e4   : > { %910 = vadd.xlane.f32.xlu0 %v909_v46 }
 0x2f1   : > { %1084 = vrot.lane.b32.xlu2 %v2373_v47, %s2133_s27 }
 0x2f5   : > { %1063 = vrot.lane.b32.xlu1 %v2375_v48, %s2133_s27 }
 0x2f8   : > { %1021 = vrot.lane.b32.xlu0 %v2377_v49, %s2133_s27 }
 0x33f   : > { %v899_v50 = vpop.xlane.xlu0 %898 }
 0x340   : > { %1852 = vrcp.f32 %v899_v50 }
 0x346   : > { %v1853_v51 = vpop.eup %1852 }
 0x347   : > { %v923_v52 = vmul.f32 %v1853_v51, %v1837_v14  ;;  %v902_v53 = vpop.xlane.xlu1 %901 }
 0x349   : > { %v931_v54 = vpack.c.bf16 %v923_v52, %v923_v52 }
 0x34b   : > { %1629 = vmatmul.msk.bf16.vlgmr.msrb.gmra.mxu0 %vm636_vm2, %v931_v54 }
 0x34c   : > { %v908_v55 = vpop.xlane.xlu2 %907 }
 0x34f   : > { %v896_v56 = vpop.xlane.xlu1 %895  ;;  %v905_v58 = vpop.xlane.xlu0 %904 }
 0x350   : > { %1854 = vrcp.f32 %v896_v56  ;;  %v2450_v59 = vpop.f32.mrf.mxu1  ;;  %v1142_v56 = vperm.slane %v2350_v10, 1 }
 0x351   : > { %1856 = vrcp.f32 %v905_v58 }
 0x354   : > { %v1085_v47 = vpop.permute.xlu2 %1084 }
 0x355   : > { %v1090_v48 = vsel %vm941_vm4, %v1085_v47, 0 }
 0x356   : > { %v1855_v60 = vpop.eup %1854  ;;  %1099 = vmatpush.bf16.msra.mxu0 %v1090_v48 }
 0x357   : > { %v1857_v49 = vpop.eup %1856  ;;  %v922_v61 = vmul.f32 %v1855_v60, %v1845_v32  ;;  %v911_v62 = vpop.xlane.xlu0 %910 }
 0x358   : > { %v925_v63 = vmul.f32 %v1857_v49, %v1847_v35  ;;  %1858 = vrcp.f32 %v911_v62  ;;  %v956_v0 = vpop.f32.mrf.mxu1  ;;  %v1689_v35 = vld [vmem:[%s2328_s1] sm:$0xff] }
 0x359   : > { %v930_v1 = vpack.c.bf16 %v922_v61, %v922_v61  ;;  %1860 = vrcp.f32 %v908_v55 }
 0x35a   : > { %v933_v2 = vpack.c.bf16 %v925_v63, %v925_v63  ;;  %1862 = vrcp.f32 %v902_v53  ;;  %v2138_v63 = vmov 32.0  }
 0x35b   : > { %1628 = vmatmul.msk.bf16.vlgmr.msra.gmra.mxu3 %vm636_vm2, %v930_v1  ;;  %1864 = vrcp.f32 %v2138_v63 }
 0x35c   : > { %1631 = vmatmul.msk.bf16.vlgmr.msrb.gmra.mxu2 %vm636_vm2, %v933_v2 }
 0x35e   : > { %v1859_v3 = vpop.eup %1858 }
 0x35f   : > { %v927_v4 = vmul.f32 %v1859_v3, %v1851_v45  ;;  %v1861_v5 = vpop.eup %1860 }
 0x360   : > { %v1863_v9 = vpop.eup %1862  ;;  %v926_v11 = vmul.f32 %v1861_v5, %v1843_v30 }
 0x361   : > { %v935_v57 = vpack.c.bf16 %v927_v4, %v927_v4  ;;  %v924_v14 = vmul.f32 %v1863_v9, %v2432_v26  ;;  %v1865_v0 = vpop.eup %1864 }
 0x362   : > { %v934_v15 = vpack.c.bf16 %v926_v11, %v926_v11  ;;  %v1181_v1 = vmul.f32 32.0, %v1865_v0  ;;  %vm1185_vm8 = vweird.f32 %v1865_v0 }
 0x363   : > { %1633 = vmatmul.msk.bf16.vlgmr.msra.gmra.mxu0 %vm636_vm2, %v935_v57  ;;  %v975_v6 = vpop.f32.mrf.mxu2  ;;  %v932_v19 = vpack.c.bf16 %v924_v14, %v924_v14 }
 0x364   : > { %v1182_v2 = vsub.f32 1.0, %v1181_v1 }
 0x366   : > { %v1183_v3 = vmul.f32 %v1865_v0, %v1182_v2 }
 0x367   : > { %v1064_v12 = vpop.permute.xlu1 %1063 }
 0x368   : > { %v1069_v13 = vsel %vm941_vm4, %v1064_v12, 0  ;;  %v1184_v4 = vadd.f32 %v1865_v0, %v1183_v3 }
 0x369   : > { %1078 = vmatpush.bf16.msrb.mxu3 %v1069_v13 }
 0x36a   : > { %v1022_v16 = vpop.permute.xlu0 %1021 }
 0x36b   : > { %v1027_v17 = vsel %vm941_vm4, %v1022_v16, 0  ;;  %v977_v18 = vpop.f32.mrf.mxu2  ;;  %v1692_v16 = vld [vmem:[%s2333_s20 + $0x8] sm:$0xff] }
 0x36c   : > { %1036 = vmatpush.bf16.msrb.mxu1 %v1027_v17  ;;  %1632 = vmatmul.msk.bf16.vlgmr.msrb.gmra.mxu3 %vm636_vm2, %v934_v15 }
 0x36d   : > { %1258 = vmatpush.bf16.msra.mxu2 %v1692_v16 }
 0x36f   : > { %1630 = vmatmul.msk.bf16.vlgmr.msrb.gmra.mxu1 %vm636_vm2, %v932_v19 }
 0x370   : > { %1164 = vmatpush.bf16.msra.mxu1 %v1690_v34 }
 0x374   : > { %1165 = vmatpush.bf16.msra.mxu1 %v1689_v35  ;;  %v1225_v35 = vperm.slane %v2350_v10, 4 }
 0x3c8   : > { %v1017_v37 = vpop.f32.mrf.mxu0 }
 0x3d0   : > { %v1019_v20 = vpop.f32.mrf.mxu0 }
 0x3de   : > { %v996_v21 = vpop.f32.mrf.mxu3 }
 0x3df   : > { %v1817_v22 = vpack.i.bf16 %v1017_v37, %v996_v21  ;;  %v1059_v23 = vpop.f32.mrf.mxu2  ;;  %v1691_v37 = vld [vmem:[%s2333_s20] sm:$0xff] }
 0x3e0   : > { %v1101_v24 = vpop.f32.mrf.mxu0  ;;  %1259 = vmatpush.bf16.msra.mxu2 %v1691_v37 }
 0x3e1   : > { %1818 = vrot.lane.b32.xlu0 %v1817_v22, %s2135_s30 }
 0x3e6   : > { %v998_v25 = vpop.f32.mrf.mxu3 }
 0x3e7   : > { %v1061_v26 = vpop.f32.mrf.mxu2 }
 0x3e8   : > { %v1103_v27 = vpop.f32.mrf.mxu0 }
 0x3ec   : > { %v1038_v28 = vpop.f32.mrf.mxu1 }
 0x3ed   : > { %v1822_v29 = vpack.i.bf16 %v1059_v23, %v1038_v28 }
 0x3ef   : > { %1823 = vrot.lane.b32.xlu1 %v1822_v29, %s2136_s21  ;;  %v1080_v30 = vpop.f32.mrf.mxu3 }
 0x3f0   : > { %v1827_v31 = vpack.i.bf16 %v1101_v24, %v1080_v30 }
 0x3f2   : > { %1828 = vrot.lane.b32.xlu2 %v1827_v31, %s2137_s25 }
 0x3f4   : > { %v1040_v32 = vpop.f32.mrf.mxu1 }
 0x3f7   : > { %v1082_v33 = vpop.f32.mrf.mxu3 }
 0x44c   : > { %v1829_v40 = vpop.permute.xlu2 %1828 }
 0x44d   : > { %v1831_v44 = vunpack.i.h.bf16 %v1829_v40  ;;  %v1830_v45 = vunpack.i.l.bf16 %v1829_v40  ;;  %v1228_v40 = vperm.slane %v2350_v10, 5 }
 0x453   : > { %v1819_v36 = vpop.permute.xlu0 %1818 }
 0x454   : > { %v1821_v38 = vunpack.i.h.bf16 %v1819_v36  ;;  %v1820_v39 = vunpack.i.l.bf16 %v1819_v36 }
 0x456   : > { %v1130_v46 = vsel %vm636_vm2, %v975_v6, %v1821_v38  ;;  %v1129_v50 = vsel %vm636_vm2, %v2450_v59, %v1820_v39 }
 0x461   : > { %v1824_v41 = vpop.permute.xlu1 %1823 }
 0x462   : > { %v1826_v42 = vunpack.i.h.bf16 %v1824_v41  ;;  %v1825_v43 = vunpack.i.l.bf16 %v1824_v41 }
 0x464   : > { %v1133_v51 = vsel %vm1131_vm6, %v1130_v46, %v1826_v42  ;;  %v1132_v52 = vsel %vm1131_vm6, %v1129_v50, %v1825_v43  ;;  %v1696_v50 = vld [vmem:[%s2338_s29 + $0x18] sm:$0xff] }
 0x465   : > { %v1135_v53 = vsel %vm1134_vm7, %v1132_v52, %v1830_v45  ;;  %v1136_v54 = vsel %vm1134_vm7, %v1133_v51, %v1831_v44  ;;  %1310 = vmatpush.bf16.msra.mxu3 %v1696_v50  ;;  %v1695_v51 = vld [vmem:[%s2338_s29 + $0x10] sm:$0xff]  ;;  %v1694_v52 = vld [vmem:[%s2338_s29 + $0x8] sm:$0xff] }
 0x466   : > { %v1137_v55 = vpack.c.bf16 %v1136_v54, %v1135_v53  ;;  %v1693_v53 = vld [vmem:[%s2338_s29] sm:$0xff] }
 0x468   : > { %1642 = vmatmul.msk.bf16.vlgmr.msra.gmra.mxu1 %vm579_vm1, %v1137_v55  ;;  %v1236_v55 = vperm.slane %v2350_v10, 2 }
 0x469   : > { %1311 = vmatpush.bf16.msra.mxu3 %v1695_v51 }
 0x46d   : > { %1312 = vmatpush.bf16.msra.mxu3 %v1694_v52 }
 0x471   : > { %1313 = vmatpush.bf16.msra.mxu3 %v1693_v53 }
 0x4e5   : > { %v1167_v58 = vpop.f32.mrf.mxu1 }
 0x4e6   : > { %v1168_v47 = vadd.f32 %v1167_v58, %v1142_v56 }
 0x4e8   : > { %v1172_v48 = vadd.f32 %v1168_v47, %v2341_v7  ;;  %v2473_v7 = vsel %vm1185_vm8, %v1865_v0, %v1184_v4 }
 0x4ea   : > { %v1174_v60 = vsel %vm579_vm1, %v1172_v48, 0.0 }
 0x4eb   : > { %1175 = vadd.xlane.f32.xlu0 %v1174_v60 }
 0x4ed   : > { %v1169_v49 = vpop.f32.mrf.mxu1 }
 0x4ee   : > { %v1170_v61 = vadd.f32 %v1169_v49, %v1142_v56 }
 0x4f0   : > { %v1173_v59 = vadd.f32 %v1170_v61, %v2343_v8  ;;  %v1277_v61 = vperm.slane %v2350_v10, 3 }
 0x4f2   : > { %v1177_v62 = vsel %vm579_vm1, %v1173_v59, 0.0 }
 0x4f3   : > { %1178 = vadd.xlane.f32.xlu1 %v1177_v62 }
 0x55e   : > { %v1176_v57 = vpop.xlane.xlu0 %1175 }
 0x55f   : > { %v1187_v5 = vmul.f32 %v2473_v7, %v1176_v57 }
 0x561   : > { %v1189_v6 = vsub.f32 %v1172_v48, %v1187_v5 }
 0x563   : > { %v1191_v8 = vmul.f32 %v1189_v6, %v1189_v6 }
 0x565   : > { %v1193_v9 = vsel %vm579_vm1, %v1191_v8, 0.0 }
 0x566   : > { %v1179_v11 = vpop.xlane.xlu1 %1178  ;;  %1194 = vadd.xlane.f32.xlu2 %v1193_v9 }
 0x567   : > { %v1188_v12 = vmul.f32 %v2473_v7, %v1179_v11 }
 0x569   : > { %v1190_v13 = vsub.f32 %v1173_v59, %v1188_v12 }
 0x56b   : > { %v1192_v14 = vmul.f32 %v1190_v13, %v1190_v13 }
 0x56d   : > { %v1196_v15 = vsel %vm579_vm1, %v1192_v14, 0.0 }
 0x56e   : > { %1197 = vadd.xlane.f32.xlu0 %v1196_v15 }
 0x5d9   : > { %v1195_v17 = vpop.xlane.xlu2 %1194 }
 0x5da   : > { %v1199_v18 = vmul.f32 %v1195_v17, %v2473_v7 }
 0x5dc   : > { %v1201_v19 = vadd.f32 1e-05, %v1199_v18 }
 0x5de   : > { %1866 = vrsqrt.f32 %v1201_v19  ;;  %vm1209_vm10 = vweird.f32 %v1201_v19 }
 0x5e1   : > { %v1198_v20 = vpop.xlane.xlu0 %1197 }
 0x5e2   : > { %v1200_v21 = vmul.f32 %v1198_v20, %v2473_v7 }
 0x5e4   : > { %v1867_v22 = vpop.eup %1866  ;;  %v1202_v23 = vadd.f32 1e-05, %v1200_v21 }
 0x5e5   : > { %v1204_v24 = vmul.f32 %v1867_v22, %v1201_v19  ;;  %vm1210_vm9 = vweird.f32 %v1867_v22 }
 0x5e6   : > { %1868 = vrsqrt.f32 %v1202_v23  ;;  %vm1211_vm11 = vmor %vm1209_vm10, %vm1210_vm9  ;;  %vm1219_vm13 = vweird.f32 %v1202_v23 }
 0x5e7   : > { %v1205_v25 = vmul.f32 %v1867_v22, %v1204_v24 }
 0x5e9   : > { %v1206_v26 = vmul.f32 0.5, %v1205_v25 }
 0x5eb   : > { %v1207_v27 = vsub.f32 1.5, %v1206_v26 }
 0x5ec   : > { %v1869_v28 = vpop.eup %1868 }
 0x5ed   : > { %v1208_v29 = vmul.f32 %v1867_v22, %v1207_v27  ;;  %v1214_v30 = vmul.f32 %v1869_v28, %v1202_v23  ;;  %vm1220_vm12 = vweird.f32 %v1869_v28 }
 0x5ee   : > { %vm1221_vm14 = vmor %vm1219_vm13, %vm1220_vm12 }
 0x5ef   : > { %v1215_v31 = vmul.f32 %v1869_v28, %v1214_v30  ;;  %v1212_v32 = vsel %vm1211_vm11, %v1867_v22, %v1208_v29  ;;  %v1366_v29 = vperm.slane %v2350_v10, 6 }
 0x5f0   : > { %v1223_v36 = vmul.f32 %v1212_v32, %v1189_v6  ;;  %v1369_v32 = vperm.slane %v2350_v10, 7 }
 0x5f1   : > { %v1216_v33 = vmul.f32 0.5, %v1215_v31 }
 0x5f2   : > { %v1226_v41 = vmul.f32 %v1225_v35, %v1223_v36 }
 0x5f3   : > { %v1217_v34 = vsub.f32 1.5, %v1216_v33 }
 0x5f4   : > { %v1229_v44 = vadd.f32 %v1228_v40, %v1226_v41 }
 0x5f5   : > { %v1218_v38 = vmul.f32 %v1869_v28, %v1217_v34 }
 0x5f7   : > { %v1222_v39 = vsel %vm1221_vm14, %v1869_v28, %v1218_v38 }
 0x5f8   : > { %v1224_v42 = vmul.f32 %v1222_v39, %v1190_v13 }
 0x5fa   : > { %v1227_v43 = vmul.f32 %v1225_v35, %v1224_v42 }
 0x5fc   : > { %v1230_v45 = vadd.f32 %v1228_v40, %v1227_v43 }
 0x5fe   : > { %v1231_v46 = vpack.c.bf16 %v1230_v45, %v1229_v44 }
 0x600   : > { %1651 = vmatmul.msk.bf16.vlgmr.msra.gmra.mxu2 %vm579_vm1, %v1231_v46 }
 0x683   : > { %v1261_v54 = vpop.f32.mrf.mxu2 }
 0x684   : > { %v1262_v56 = vadd.f32 %v1261_v54, %v1236_v55 }
 0x686   : > { %v1266_v48 = vmax.f32 %v1262_v56, 0.0 }
 0x68b   : > { %v1263_v58 = vpop.f32.mrf.mxu2 }
 0x68c   : > { %v1264_v47 = vadd.f32 %v1263_v58, %v1236_v55 }
 0x68e   : > { %v1267_v60 = vmax.f32 %v1264_v47, 0.0 }
 0x690   : > { %v1268_v49 = vpack.c.bf16 %v1267_v60, %v1266_v48 }
 0x692   : > { %1668 = vmatmul.msk.bf16.vlgmr.msra.gmra.mxu3 %vm1302_vm15, %v1268_v49 }
 0x715   : > { %v1315_v59 = vpop.f32.mrf.mxu3 }
 0x716   : > { %v1316_v62 = vadd.f32 %v1315_v59, %v1277_v61 }
 0x718   : > { %v1320_v63 = vadd.f32 %v1316_v62, %v1229_v44 }
 0x71a   : > { %v1322_v0 = vsel %vm579_vm1, %v1320_v63, 0.0 }
 0x71b   : > { %1323 = vadd.xlane.f32.xlu1 %v1322_v0 }
 0x71d   : > { %v1317_v1 = vpop.f32.mrf.mxu3 }
 0x71e   : > { %v1318_v2 = vadd.f32 %v1317_v1, %v1277_v61 }
 0x720   : > { %v1321_v3 = vadd.f32 %v1318_v2, %v1230_v45 }
 0x722   : > { %v1325_v4 = vsel %vm579_vm1, %v1321_v3, 0.0 }
 0x723   : > { %1326 = vadd.xlane.f32.xlu2 %v1325_v4 }
 0x78e   : > { %v1324_v57 = vpop.xlane.xlu1 %1323 }
 0x78f   : > { %v1328_v5 = vmul.f32 %v1324_v57, %v2473_v7 }
 0x791   : > { %v1330_v6 = vsub.f32 %v1320_v63, %v1328_v5 }
 0x793   : > { %v1332_v8 = vmul.f32 %v1330_v6, %v1330_v6 }
 0x795   : > { %v1334_v9 = vsel %vm579_vm1, %v1332_v8, 0.0 }
 0x796   : > { %v1327_v11 = vpop.xlane.xlu2 %1326  ;;  %1335 = vadd.xlane.f32.xlu0 %v1334_v9 }
 0x797   : > { %v1329_v12 = vmul.f32 %v1327_v11, %v2473_v7 }
 0x799   : > { %v1331_v13 = vsub.f32 %v1321_v3, %v1329_v12 }
 0x79b   : > { %v1333_v14 = vmul.f32 %v1331_v13, %v1331_v13 }
 0x79d   : > { %v1337_v15 = vsel %vm579_vm1, %v1333_v14, 0.0 }
 0x79e   : > { %1338 = vadd.xlane.f32.xlu1 %v1337_v15 }
 0x809   : > { %v1336_v16 = vpop.xlane.xlu0 %1335 }
 0x80a   : > { %v1340_v17 = vmul.f32 %v1336_v16, %v2473_v7 }
 0x80c   : > { %v1342_v18 = vadd.f32 1e-05, %v1340_v17 }
 0x80e   : > { %1870 = vrsqrt.f32 %v1342_v18  ;;  %vm1350_vm2 = vweird.f32 %v1342_v18 }
 0x811   : > { %v1339_v19 = vpop.xlane.xlu1 %1338 }
 0x812   : > { %v1341_v37 = vmul.f32 %v1339_v19, %v2473_v7 }
 0x814   : > { %v1871_v20 = vpop.eup %1870  ;;  %v1343_v21 = vadd.f32 1e-05, %v1341_v37 }
 0x815   : > { %v1345_v22 = vmul.f32 %v1871_v20, %v1342_v18  ;;  %vm1351_vm0 = vweird.f32 %v1871_v20 }
 0x816   : > { %1872 = vrsqrt.f32 %v1343_v21  ;;  %vm1352_vm3 = vmor %vm1350_vm2, %vm1351_vm0  ;;  %vm1360_vm5 = vweird.f32 %v1343_v21 }
 0x817   : > { %v1346_v23 = vmul.f32 %v1871_v20, %v1345_v22 }
 0x819   : > { %v1347_v24 = vmul.f32 0.5, %v1346_v23 }
 0x81b   : > { %v1348_v25 = vsub.f32 1.5, %v1347_v24 }
 0x81c   : > { %v1873_v26 = vpop.eup %1872 }
 0x81d   : > { %v1349_v27 = vmul.f32 %v1871_v20, %v1348_v25  ;;  %v1355_v28 = vmul.f32 %v1873_v26, %v1343_v21  ;;  %vm1361_vm4 = vweird.f32 %v1873_v26 }
 0x81e   : > { %vm1362_vm6 = vmor %vm1360_vm5, %vm1361_vm4 }
 0x81f   : > { %v1353_v30 = vsel %vm1352_vm3, %v1871_v20, %v1349_v27  ;;  %v1356_v31 = vmul.f32 %v1873_v26, %v1355_v28 }
 0x820   : > { %v1364_v7 = vmul.f32 %v1353_v30, %v1330_v6 }
 0x821   : > { %v1357_v33 = vmul.f32 0.5, %v1356_v31 }
 0x822   : > { %v1367_v34 = vmul.f32 %v1366_v29, %v1364_v7 }
 0x823   : > { %v1358_v35 = vsub.f32 1.5, %v1357_v33 }
 0x824   : > { %v1370_v36 = vadd.f32 %v1369_v32, %v1367_v34 }
 0x825   : > { %v1359_v38 = vmul.f32 %v1873_v26, %v1358_v35 }
 0x826   : > { %1372 = vst.msk [vmem:[#allocation2] sm:$0xff] %vm579_vm1, %v1370_v36 }
 0x827   : > { %v1363_v39 = vsel %vm1362_vm6, %v1873_v26, %v1359_v38 }
 0x828   : > { %v1365_v40 = vmul.f32 %v1363_v39, %v1331_v13 }
 0x82a   : > { %v1368_v41 = vmul.f32 %v1366_v29, %v1365_v40  ;;  %1377 = sbr.rel (%p1669_p3) target bundleno = 2240 (0x8c0), region = 88 }
 0x82c   : > { %v1371_v42 = vadd.f32 %v1369_v32, %v1368_v41 }
 0x82e   : > { %1373 = vst.msk [vmem:[#allocation2 + $0x8] sm:$0xff] %vm579_vm1, %v1371_v42 }
 0x82f   : > { %v1698_v10 = vld [vmem:[#allocation11 + $0x8] sm:$0xff]  ;;  %v1697_v43 = vld [vmem:[#allocation11] sm:$0xff]  ;;  %v1378_v44 = vpack.c.bf16 %v1371_v42, %v1370_v36  ;;  %v1874_v45 = vld [vmem:[%s2543_s9] ss:$0 sm:$0xff] }
 0x830   : > { %1408 = vmatpush.bf16.msra.mxu0 %v1698_v10 }
 0x834   : > { %1409 = vmatpush.bf16.msra.mxu0 %v1697_v43 }
 0x837   : > { %1678 = vmatmul.msk.bf16.vlgmr.msra.gmra.mxu0 %vm579_vm1, %v1378_v44 }
 0x8b4   : > { %v1411_v46 = vpop.f32.mrf.mxu0 }
 0x8b5   : > { %v1412_v50 = vadd.f32 %v1874_v45, %v1411_v46 }
 0x8b7   : > { %1416 = vst.msk [vmem:[#allocation12] sm:$0xff] %vm579_vm1, %v1412_v50 }
 0x8bc   : > { %v1413_v51 = vpop.f32.mrf.mxu0 }
 0x8bd   : > { %v1414_v52 = vadd.f32 %v1874_v45, %v1413_v51 }
 0x8bf   : > { %1417 = vst.msk [vmem:[#allocation12 + $0x8] sm:$0xff] %vm579_vm1, %v1414_v52 }
 0x8c0 PF: > { %p1747_p4 = scmp.eq.s32.totalorder %s2230_s22, 1  ;;  %s2557_s11 = sld [smem:[#allocation21_spill]] }
 0x8c1   : > { %s2139_s0 = smov [#allocation12]   ;;  %s2140_s12 = smov 128  }
 0x8c2   : > { %s1426_s23 = sshll.u32 %s2139_s0, 4  ;;  %s1427_s23 = int_to_ptr.vmem [resolvable:$true] %s1426_s23 }
 0x8c6   : > { %s1428_s20 = sshll.u32 %s2557_s11, 4  ;;  %s1429_s20 = int_to_ptr.hbm [resolvable:$true] %s1428_s20 }
 0x8c7   : > { %1718 = dma.vmem_to_hbm [thread:$0]  (%p1747_p4), %s1427_s23, 256, %s1429_s20, [#allocation5], %s2140_s12, %s2140_s12, %s2135_s30  }
 0x8c8   : > { %2094 = dma.done.wait (%p1747_p4), [#allocation5], 256  }
 0x8c9   : > { %2096 = vsyncadd (%p1747_p4), [#allocation5], 4294967040 }
 0x8ca PF: > { %s26_s18 = sadd.s32 1, %s2119_s18   ;;  %s2558_s22 = smov %s2289_s13 }
 0x8cb   : > { %p23_p5 = scmp.ge.s32.totalorder %s26_s18, 4   ;;  %s2559_s13 = smov %s2103_s14 }
 0x8cc   : > { %s2560_s14 = smov %s2107_s15  ;;  %s2561_s15 = smov %s2558_s22 }
 0x8cd   : > { %s2562_s16 = smov %s2115_s17  ;;  %s2563_s17 = smov %s2565_s8 }
 0x8ce   :  { %25 = sbr.rel (!%p23_p5) target bundleno = 12 (0xc), region = 137 }
 0x8d3   :  { %1445 = vsyncpa [#allocation4], 1 }
 0x8d4   :  { %1447 = vsyncpa [#allocation4 + $0x1], 1 }
 0x8d5   :  { %1448 = vsyncpa [#allocation7], 1 }
 0x8d6   :  { %1449 = vsyncpa [#allocation10], 1 }
 0x8d7   :  { %1451 = vsyncpa [#allocation10 + $0x1], 1 }
 0x8d8   :  { %1452 = vsyncpa [#allocation5], 1 }
 0x8d9   :  { %1454 = vsyncpa [#allocation5 + $0x1], 1 }

</bundles_post_ra>
